<compile_context>
chip_gen: v7x
topology: tpu7x:2x2x1
jax: 0.10.0
libtpu: 0.0.40
codegen_flags: <defaults>
</compile_context>

<pallas_src>
import jax
import jax.numpy as jnp
from jax.experimental import pallas as pl
from jax.experimental.pallas import tpu as pltpu


def _lstm_kernel(len_ref, x_ref, wih_ref, whh_ref, b_ref,
                 out_ref, hn_ref, cn_ref, xg_sc):
    T, Bt, E = x_ref.shape
    H = hn_ref.shape[1]

    # ---- Pre-phase: hoist the input projection out of the recurrence. ----
    # One (T*Bt, E) x (E, 4H) MXU matmul for all timesteps, bias folded in.
    x_all = x_ref[...].reshape(T * Bt, E)
    xg = jnp.dot(x_all, wih_ref[...],
                 preferred_element_type=jnp.float32) + b_ref[...]
    xg_sc[...] = xg.reshape(T, Bt, 4 * H)

    whh = whh_ref[...]                      # (H, 4H), loaded once
    len_col = len_ref[...]                  # (Bt, 1) int32

    # Loop-invariant lane mask selecting the tanh ("g") gate lanes.
    lane = jax.lax.broadcasted_iota(jnp.int32, (Bt, 4 * H), 1)
    g_lanes = (lane >= 2 * H) & (lane < 3 * H)

    h0 = jnp.zeros((Bt, H), jnp.float32)
    c0 = jnp.zeros((Bt, H), jnp.float32)

    def step(t, carry):
        h_prev, c_prev = carry
        # Serial critical path per step: one (Bt,H)x(H,4H) matmul + VPU/EUP.
        gates = xg_sc[t] + jnp.dot(h_prev, whh,
                                   preferred_element_type=jnp.float32)
        # Full-vreg activation: tanh on the g lanes, sigmoid elsewhere.
        act = jnp.where(g_lanes, jnp.tanh(gates), jax.nn.sigmoid(gates))
        i_g = act[:, 0 * H:1 * H]
        f_g = act[:, 1 * H:2 * H]
        g_g = act[:, 2 * H:3 * H]
        o_g = act[:, 3 * H:4 * H]

        c_new = f_g * c_prev + i_g * g_g
        h_new = o_g * jnp.tanh(c_new)

        # packed-sequence masking: rows with t >= length freeze their state and
        # emit zeros (pad_packed_sequence behavior).
        valid = (t < len_col).astype(jnp.float32)       # (Bt, 1)
        h_nxt = valid * h_new + (1.0 - valid) * h_prev
        c_nxt = valid * c_new + (1.0 - valid) * c_prev

        out_ref[t] = (valid * h_new).astype(out_ref.dtype)
        return (h_nxt, c_nxt)

    h_fin, c_fin = jax.lax.fori_loop(0, T, step, (h0, c0), unroll=True)

    hn_ref[...] = h_fin.astype(hn_ref.dtype)
    cn_ref[...] = c_fin.astype(cn_ref.dtype)


def lstm_pallas(x_tbe, lengths, w_ih, w_hh, b_ih, b_hh, *, b_tile=8):
    """x_tbe: (T, B, E) float32 time-major embedded inputs."""
    T, B, E = x_tbe.shape
    H = w_hh.shape[1]
    assert w_ih.shape == (4 * H, E) and w_hh.shape == (4 * H, H)

    # Pad batch to a multiple of 8 sublanes (padded rows have length 0 ->
    # outputs / states stay zero and are sliced away below).
    Bp = ((B + b_tile - 1) // b_tile) * b_tile
    if Bp != B:
        x_tbe = jnp.pad(x_tbe, ((0, 0), (0, Bp - B), (0, 0)))
        lengths = jnp.pad(lengths, (0, Bp - B))

    wih_t = jnp.transpose(w_ih)                        # (E, 4H)
    whh_t = jnp.transpose(w_hh)                        # (H, 4H)
    b = (b_ih + b_hh).reshape(1, 4 * H)                # (1, 4H)
    len_col = lengths.astype(jnp.int32).reshape(Bp, 1)

    out_t, h_n, c_n = pl.pallas_call(
        _lstm_kernel,
        out_shape=(
            jax.ShapeDtypeStruct((T, Bp, H), jnp.float32),  # time-major outputs
            jax.ShapeDtypeStruct((Bp, H), jnp.float32),     # h_n
            jax.ShapeDtypeStruct((Bp, H), jnp.float32),     # c_n
        ),
        grid_spec=pltpu.PrefetchScalarGridSpec(
            num_scalar_prefetch=0,
            grid=(Bp // b_tile,),                           # batch tiles only
            in_specs=[
                pl.BlockSpec((b_tile, 1), lambda b: (b, 0)),        # lengths
                pl.BlockSpec((T, b_tile, E), lambda b: (0, b, 0)),  # x (all T)
                pl.BlockSpec((E, 4 * H), lambda b: (0, 0)),         # W_ih^T
                pl.BlockSpec((H, 4 * H), lambda b: (0, 0)),         # W_hh^T
                pl.BlockSpec((1, 4 * H), lambda b: (0, 0)),         # bias
            ],
            out_specs=[
                pl.BlockSpec((T, b_tile, H), lambda b: (0, b, 0)),  # outputs
                pl.BlockSpec((b_tile, H), lambda b: (b, 0)),        # h_n
                pl.BlockSpec((b_tile, H), lambda b: (b, 0)),        # c_n
            ],
            scratch_shapes=[
                pltpu.VMEM((T, b_tile, 4 * H), jnp.float32),  # hoisted x-proj
            ],
        ),
        compiler_params=pltpu.CompilerParams(
            dimension_semantics=("parallel",)),   # batch tiles are independent
    )(len_col, x_tbe, wih_t, whh_t, b)

    return out_t[:, :B], h_n[:B], c_n[:B]


def token_encoder_forward(tokens, lengths, params):
    """Matches TokenEncoder.forward: returns (out, (h_n, c_n))."""
    # Embedding gather (glue, plain JAX), produced directly time-major by
    # transposing the cheap int32 token ids rather than the f32 activations.
    x_tbe = jnp.take(params["embed"], tokens.T, axis=0)     # (T, B, E) f32

    out_t, h_n, c_n = lstm_pallas(
        x_tbe, lengths,
        params["w_ih"], params["w_hh"], params["b_ih"], params["b_hh"])

    # batch_first=True output required by the module contract.
    out = jnp.transpose(out_t, (1, 0, 2))                    # (B, T, H)
    # pad_packed_sequence pads only to max(lengths); example uses max(lengths)==T.
    hidden = (h_n[None], c_n[None])                          # (1, B, H) each
    return out, hidden


def _lstm_reference(tokens, lengths, params):
    """Pure-JAX reference of Embedding + packed single-layer LSTM."""
    x = jnp.take(params["embed"], tokens, axis=0)  # (B, T, E)
    B, T, _ = x.shape
    H = params["w_hh"].shape[1]
    h = jnp.zeros((B, H), jnp.float32)
    c = jnp.zeros((B, H), jnp.float32)
    outs = []
    for t in range(T):
        gates = (x[:, t, :] @ params["w_ih"].T + params["b_ih"]
                 + h @ params["w_hh"].T + params["b_hh"])
        i, f, g, o = jnp.split(gates, 4, axis=-1)
        i, f, o = jax.nn.sigmoid(i), jax.nn.sigmoid(f), jax.nn.sigmoid(o)
        g = jnp.tanh(g)
        c_new = f * c + i * g
        h_new = o * jnp.tanh(c_new)
        valid = (t < lengths)[:, None].astype(jnp.float32)
        h = valid * h_new + (1 - valid) * h
        c = valid * c_new + (1 - valid) * c
        outs.append(valid * h_new)
    out = jnp.stack(outs, axis=1)
    return out, (h[None], c[None])


if __name__ == "__main__":
    VOCAB, EMBED, HIDDEN = 50, 16, 32
    B, T = 4, 8

    key = jax.random.PRNGKey(0)
    k_emb, k_wih, k_whh, k_bih, k_bhh, k_tok = jax.random.split(key, 6)
    k = 1.0 / jnp.sqrt(HIDDEN)

    params = {
        "embed": jax.random.normal(k_emb, (VOCAB, EMBED), jnp.float32) * 0.1,
        "w_ih": jax.random.uniform(k_wih, (4 * HIDDEN, EMBED), jnp.float32, -k, k),
        "w_hh": jax.random.uniform(k_whh, (4 * HIDDEN, HIDDEN), jnp.float32, -k, k),
        "b_ih": jax.random.uniform(k_bih, (4 * HIDDEN,), jnp.float32, -k, k),
        "b_hh": jax.random.uniform(k_bhh, (4 * HIDDEN,), jnp.float32, -k, k),
    }

    tokens = jax.random.randint(k_tok, (B, T), 0, VOCAB, jnp.int32)
    lengths = jnp.array([T, 5, 3, 7], jnp.int32)   # max(lengths) == T

    out, (h_n, c_n) = token_encoder_forward(tokens, lengths, params)
    jax.block_until_ready((out, h_n, c_n))

    # Correctness check against pure-JAX reference.
    out_ref, (h_ref, c_ref) = _lstm_reference(tokens, lengths, params)
    assert out.shape == (B, T, HIDDEN)
    assert h_n.shape == (1, B, HIDDEN) and c_n.shape == (1, B, HIDDEN)
    assert jnp.allclose(out, out_ref, atol=1e-5)
    assert jnp.allclose(h_n, h_ref, atol=1e-5)
    assert jnp.allclose(c_n, c_ref, atol=1e-5)

    print("KERNEL_OK")
</pallas_src>

<mosaic_0001>
module attributes {stable_mosaic.version = 11 : i64} {
  func.func @_lstm_kernel(%arg0: i32, %arg1: memref<8x1xi32, #tpu.memory_space<vmem>>, %arg2: memref<8x8x16xf32, #tpu.memory_space<vmem>>, %arg3: memref<16x128xf32, #tpu.memory_space<vmem>>, %arg4: memref<32x128xf32, #tpu.memory_space<vmem>>, %arg5: memref<1x128xf32, #tpu.memory_space<vmem>>, %arg6: memref<8x8x32xf32, #tpu.memory_space<vmem>>, %arg7: memref<8x32xf32, #tpu.memory_space<vmem>>, %arg8: memref<8x32xf32, #tpu.memory_space<vmem>>, %arg9: memref<8x8x128xf32, #tpu.memory_space<vmem>>) attributes {dimension_semantics = [#tpu.dimension_semantics<parallel>], iteration_bounds = array<i64: 1>, scalar_prefetch = 0 : i64, scratch_operands = 1 : i64, tpu.core_type = #tpu.core_type<tc>, window_params = [{transform_indices = @transform_0, window_bounds = array<i64: 8, 1>}, {transform_indices = @transform_1, window_bounds = array<i64: 8, 8, 16>}, {pipeline_mode = #tpu.pipeline_mode<synchronous>, transform_indices = @transform_2, window_bounds = array<i64: 16, 128>}, {pipeline_mode = #tpu.pipeline_mode<synchronous>, transform_indices = @transform_3, window_bounds = array<i64: 32, 128>}, {pipeline_mode = #tpu.pipeline_mode<synchronous>, transform_indices = @transform_4, window_bounds = array<i64: 1, 128>}, {transform_indices = @transform_5, window_bounds = array<i64: 8, 8, 32>}, {transform_indices = @transform_6, window_bounds = array<i64: 8, 32>}, {transform_indices = @transform_7, window_bounds = array<i64: 8, 32>}]} {
    %c0 = arith.constant 0 : index
    %c0_0 = arith.constant 0 : index
    %c0_1 = arith.constant 0 : index
    %0 = vector.load %arg2[%c0, %c0_0, %c0_1] : memref<8x8x16xf32, #tpu.memory_space<vmem>>, vector<8x8x16xf32>
    %1 = vector.shape_cast %0 : vector<8x8x16xf32> to vector<64x16xf32>
    %c0_2 = arith.constant 0 : index
    %c0_3 = arith.constant 0 : index
    %2 = vector.load %arg3[%c0_2, %c0_3] : memref<16x128xf32, #tpu.memory_space<vmem>>, vector<16x128xf32>
    %cst = arith.constant dense<0.000000e+00> : vector<64x128xf32>
    %3 = tpu.matmul %1, %2, %cst {dimension_numbers = #tpu.dot_dimension_numbers<[1], [0], [0], [1], [0, 0, 1, 1], [], []>} : vector<64x16xf32>, vector<16x128xf32>, vector<64x128xf32> -> vector<64x128xf32>
    %c0_4 = arith.constant 0 : index
    %c0_5 = arith.constant 0 : index
    %4 = vector.load %arg5[%c0_4, %c0_5] : memref<1x128xf32, #tpu.memory_space<vmem>>, vector<1x128xf32>
    %5 = vector.broadcast %4 : vector<1x128xf32> to vector<64x128xf32>
    %6 = arith.addf %3, %5 : vector<64x128xf32>
    %7 = vector.shape_cast %6 : vector<64x128xf32> to vector<8x8x128xf32>
    %c0_6 = arith.constant 0 : index
    %c0_7 = arith.constant 0 : index
    %c0_8 = arith.constant 0 : index
    %8 = vector.load %arg9[%c0_6, %c0_7, %c0_8] : memref<8x8x128xf32, #tpu.memory_space<vmem>>, vector<8x8x128xf32>
    tpu.vector_store %arg9[%c0_6, %c0_7, %c0_8], %7 {strides = array<i32>} : memref<8x8x128xf32, #tpu.memory_space<vmem>>, vector<8x8x128xf32>,
    %c0_9 = arith.constant 0 : index
    %c0_10 = arith.constant 0 : index
    %9 = vector.load %arg4[%c0_9, %c0_10] : memref<32x128xf32, #tpu.memory_space<vmem>>, vector<32x128xf32>
    %c0_11 = arith.constant 0 : index
    %c0_12 = arith.constant 0 : index
    %10 = vector.load %arg1[%c0_11, %c0_12] : memref<8x1xi32, #tpu.memory_space<vmem>>, vector<8x1xi32>
    %11 = tpu.iota {dimensions = array<i32: 1>} : vector<8x128xi32>
    %c64_i32 = arith.constant 64 : i32
    %12 = vector.broadcast %c64_i32 : i32 to vector<8x128xi32>
    %13 = arith.cmpi sge, %11, %12 : vector<8x128xi32>
    %c96_i32 = arith.constant 96 : i32
    %14 = vector.broadcast %c96_i32 : i32 to vector<8x128xi32>
    %15 = arith.cmpi slt, %11, %14 : vector<8x128xi32>
    %16 = arith.andi %13, %15 : vector<8x128xi1>
    %cst_13 = arith.constant 0.000000e+00 : f32
    %17 = vector.broadcast %cst_13 : f32 to vector<8x32xf32>
    %cst_14 = arith.constant 0.000000e+00 : f32
    %18 = vector.broadcast %cst_14 : f32 to vector<8x32xf32>
    %c0_i32 = arith.constant 0 : i32
    %19 = arith.index_cast %c0_i32 : i32 to index
    %c0_15 = arith.constant 0 : index
    %c0_16 = arith.constant 0 : index
    %20 = vector.load %arg9[%19, %c0_15, %c0_16] : memref<8x8x128xf32, #tpu.memory_space<vmem>>, vector<1x8x128xf32>
    %21 = vector.shape_cast %20 : vector<1x8x128xf32> to vector<8x128xf32>
    %cst_17 = arith.constant dense<0.000000e+00> : vector<8x128xf32>
    %22 = tpu.matmul %17, %9, %cst_17 {dimension_numbers = #tpu.dot_dimension_numbers<[1], [0], [0], [1], [0, 0, 1, 1], [], []>} : vector<8x32xf32>, vector<32x128xf32>, vector<8x128xf32> -> vector<8x128xf32>
    %23 = arith.addf %21, %22 : vector<8x128xf32>
    %24 = math.tanh %23 : vector<8x128xf32>
    %25 = arith.negf %23 : vector<8x128xf32>
    %26 = math.exp %25 : vector<8x128xf32>
    %cst_18 = arith.constant 1.000000e+00 : f32
    %27 = vector.broadcast %cst_18 : f32 to vector<8x128xf32>
    %28 = arith.addf %27, %26 : vector<8x128xf32>
    %29 = arith.divf %27, %28 : vector<8x128xf32>
    %30 = arith.select %16, %24, %29 : vector<8x128xi1>, vector<8x128xf32>
    %31 = vector.extract_strided_slice %30 {offsets = [0, 0], sizes = [8, 32], strides = [1, 1]} : vector<8x128xf32> to vector<8x32xf32>
    %32 = vector.extract_strided_slice %30 {offsets = [0, 32], sizes = [8, 32], strides = [1, 1]} : vector<8x128xf32> to vector<8x32xf32>
    %33 = vector.extract_strided_slice %30 {offsets = [0, 64], sizes = [8, 32], strides = [1, 1]} : vector<8x128xf32> to vector<8x32xf32>
    %34 = vector.extract_strided_slice %30 {offsets = [0, 96], sizes = [8, 32], strides = [1, 1]} : vector<8x128xf32> to vector<8x32xf32>
    %35 = arith.mulf %32, %18 : vector<8x32xf32>
    %36 = arith.mulf %31, %33 : vector<8x32xf32>
    %37 = arith.addf %35, %36 : vector<8x32xf32>
    %38 = math.tanh %37 : vector<8x32xf32>
    %39 = arith.mulf %34, %38 : vector<8x32xf32>
    %40 = vector.broadcast %c0_i32 : i32 to vector<8x1xi32>
    %41 = arith.cmpi slt, %40, %10 : vector<8x1xi32>
    %42 = arith.extui %41 : vector<8x1xi1> to vector<8x1xi32>
    %43 = arith.sitofp %42 : vector<8x1xi32> to vector<8x1xf32>
    %44 = vector.broadcast %43 : vector<8x1xf32> to vector<8x32xf32>
    %45 = arith.mulf %44, %39 : vector<8x32xf32>
    %cst_19 = arith.constant 1.000000e+00 : f32
    %46 = vector.broadcast %cst_19 : f32 to vector<8x1xf32>
    %47 = arith.subf %46, %43 : vector<8x1xf32>
    %48 = vector.broadcast %47 : vector<8x1xf32> to vector<8x32xf32>
    %49 = arith.mulf %48, %17 : vector<8x32xf32>
    %50 = arith.addf %45, %49 : vector<8x32xf32>
    %51 = vector.broadcast %43 : vector<8x1xf32> to vector<8x32xf32>
    %52 = arith.mulf %51, %37 : vector<8x32xf32>
    %cst_20 = arith.constant 1.000000e+00 : f32
    %53 = vector.broadcast %cst_20 : f32 to vector<8x1xf32>
    %54 = arith.subf %53, %43 : vector<8x1xf32>
    %55 = vector.broadcast %54 : vector<8x1xf32> to vector<8x32xf32>
    %56 = arith.mulf %55, %18 : vector<8x32xf32>
    %57 = arith.addf %52, %56 : vector<8x32xf32>
    %58 = vector.broadcast %43 : vector<8x1xf32> to vector<8x32xf32>
    %59 = arith.mulf %58, %39 : vector<8x32xf32>
    %60 = arith.index_cast %c0_i32 : i32 to index
    %c0_21 = arith.constant 0 : index
    %c0_22 = arith.constant 0 : index
    %61 = vector.load %arg6[%60, %c0_21, %c0_22] : memref<8x8x32xf32, #tpu.memory_space<vmem>>, vector<1x8x32xf32>
    %62 = vector.shape_cast %61 : vector<1x8x32xf32> to vector<8x32xf32>
    %63 = vector.shape_cast %59 : vector<8x32xf32> to vector<1x8x32xf32>
    tpu.vector_store %arg6[%60, %c0_21, %c0_22], %63 {strides = array<i32>} : memref<8x8x32xf32, #tpu.memory_space<vmem>>, vector<1x8x32xf32>,
    %c1_i32 = arith.constant 1 : i32
    %64 = arith.index_cast %c1_i32 : i32 to index
    %c0_23 = arith.constant 0 : index
    %c0_24 = arith.constant 0 : index
    %65 = vector.load %arg9[%64, %c0_23, %c0_24] : memref<8x8x128xf32, #tpu.memory_space<vmem>>, vector<1x8x128xf32>
    %66 = vector.shape_cast %65 : vector<1x8x128xf32> to vector<8x128xf32>
    %cst_25 = arith.constant dense<0.000000e+00> : vector<8x128xf32>
    %67 = tpu.matmul %50, %9, %cst_25 {dimension_numbers = #tpu.dot_dimension_numbers<[1], [0], [0], [1], [0, 0, 1, 1], [], []>} : vector<8x32xf32>, vector<32x128xf32>, vector<8x128xf32> -> vector<8x128xf32>
    %68 = arith.addf %66, %67 : vector<8x128xf32>
    %69 = math.tanh %68 : vector<8x128xf32>
    %70 = arith.negf %68 : vector<8x128xf32>
    %71 = math.exp %70 : vector<8x128xf32>
    %cst_26 = arith.constant 1.000000e+00 : f32
    %72 = vector.broadcast %cst_26 : f32 to vector<8x128xf32>
    %73 = arith.addf %72, %71 : vector<8x128xf32>
    %74 = arith.divf %72, %73 : vector<8x128xf32>
    %75 = arith.select %16, %69, %74 : vector<8x128xi1>, vector<8x128xf32>
    %76 = vector.extract_strided_slice %75 {offsets = [0, 0], sizes = [8, 32], strides = [1, 1]} : vector<8x128xf32> to vector<8x32xf32>
    %77 = vector.extract_strided_slice %75 {offsets = [0, 32], sizes = [8, 32], strides = [1, 1]} : vector<8x128xf32> to vector<8x32xf32>
    %78 = vector.extract_strided_slice %75 {offsets = [0, 64], sizes = [8, 32], strides = [1, 1]} : vector<8x128xf32> to vector<8x32xf32>
    %79 = vector.extract_strided_slice %75 {offsets = [0, 96], sizes = [8, 32], strides = [1, 1]} : vector<8x128xf32> to vector<8x32xf32>
    %80 = arith.mulf %77, %57 : vector<8x32xf32>
    %81 = arith.mulf %76, %78 : vector<8x32xf32>
    %82 = arith.addf %80, %81 : vector<8x32xf32>
    %83 = math.tanh %82 : vector<8x32xf32>
    %84 = arith.mulf %79, %83 : vector<8x32xf32>
    %85 = vector.broadcast %c1_i32 : i32 to vector<8x1xi32>
    %86 = arith.cmpi slt, %85, %10 : vector<8x1xi32>
    %87 = arith.extui %86 : vector<8x1xi1> to vector<8x1xi32>
    %88 = arith.sitofp %87 : vector<8x1xi32> to vector<8x1xf32>
    %89 = vector.broadcast %88 : vector<8x1xf32> to vector<8x32xf32>
    %90 = arith.mulf %89, %84 : vector<8x32xf32>
    %cst_27 = arith.constant 1.000000e+00 : f32
    %91 = vector.broadcast %cst_27 : f32 to vector<8x1xf32>
    %92 = arith.subf %91, %88 : vector<8x1xf32>
    %93 = vector.broadcast %92 : vector<8x1xf32> to vector<8x32xf32>
    %94 = arith.mulf %93, %50 : vector<8x32xf32>
    %95 = arith.addf %90, %94 : vector<8x32xf32>
    %96 = vector.broadcast %88 : vector<8x1xf32> to vector<8x32xf32>
    %97 = arith.mulf %96, %82 : vector<8x32xf32>
    %cst_28 = arith.constant 1.000000e+00 : f32
    %98 = vector.broadcast %cst_28 : f32 to vector<8x1xf32>
    %99 = arith.subf %98, %88 : vector<8x1xf32>
    %100 = vector.broadcast %99 : vector<8x1xf32> to vector<8x32xf32>
    %101 = arith.mulf %100, %57 : vector<8x32xf32>
    %102 = arith.addf %97, %101 : vector<8x32xf32>
    %103 = vector.broadcast %88 : vector<8x1xf32> to vector<8x32xf32>
    %104 = arith.mulf %103, %84 : vector<8x32xf32>
    %105 = arith.index_cast %c1_i32 : i32 to index
    %c0_29 = arith.constant 0 : index
    %c0_30 = arith.constant 0 : index
    %106 = vector.load %arg6[%105, %c0_29, %c0_30] : memref<8x8x32xf32, #tpu.memory_space<vmem>>, vector<1x8x32xf32>
    %107 = vector.shape_cast %106 : vector<1x8x32xf32> to vector<8x32xf32>
    %108 = vector.shape_cast %104 : vector<8x32xf32> to vector<1x8x32xf32>
    tpu.vector_store %arg6[%105, %c0_29, %c0_30], %108 {strides = array<i32>} : memref<8x8x32xf32, #tpu.memory_space<vmem>>, vector<1x8x32xf32>,
    %c2_i32 = arith.constant 2 : i32
    %109 = arith.index_cast %c2_i32 : i32 to index
    %c0_31 = arith.constant 0 : index
    %c0_32 = arith.constant 0 : index
    %110 = vector.load %arg9[%109, %c0_31, %c0_32] : memref<8x8x128xf32, #tpu.memory_space<vmem>>, vector<1x8x128xf32>
    %111 = vector.shape_cast %110 : vector<1x8x128xf32> to vector<8x128xf32>
    %cst_33 = arith.constant dense<0.000000e+00> : vector<8x128xf32>
    %112 = tpu.matmul %95, %9, %cst_33 {dimension_numbers = #tpu.dot_dimension_numbers<[1], [0], [0], [1], [0, 0, 1, 1], [], []>} : vector<8x32xf32>, vector<32x128xf32>, vector<8x128xf32> -> vector<8x128xf32>
    %113 = arith.addf %111, %112 : vector<8x128xf32>
    %114 = math.tanh %113 : vector<8x128xf32>
    %115 = arith.negf %113 : vector<8x128xf32>
    %116 = math.exp %115 : vector<8x128xf32>
    %cst_34 = arith.constant 1.000000e+00 : f32
    %117 = vector.broadcast %cst_34 : f32 to vector<8x128xf32>
    %118 = arith.addf %117, %116 : vector<8x128xf32>
    %119 = arith.divf %117, %118 : vector<8x128xf32>
    %120 = arith.select %16, %114, %119 : vector<8x128xi1>, vector<8x128xf32>
    %121 = vector.extract_strided_slice %120 {offsets = [0, 0], sizes = [8, 32], strides = [1, 1]} : vector<8x128xf32> to vector<8x32xf32>
    %122 = vector.extract_strided_slice %120 {offsets = [0, 32], sizes = [8, 32], strides = [1, 1]} : vector<8x128xf32> to vector<8x32xf32>
    %123 = vector.extract_strided_slice %120 {offsets = [0, 64], sizes = [8, 32], strides = [1, 1]} : vector<8x128xf32> to vector<8x32xf32>
    %124 = vector.extract_strided_slice %120 {offsets = [0, 96], sizes = [8, 32], strides = [1, 1]} : vector<8x128xf32> to vector<8x32xf32>
    %125 = arith.mulf %122, %102 : vector<8x32xf32>
    %126 = arith.mulf %121, %123 : vector<8x32xf32>
    %127 = arith.addf %125, %126 : vector<8x32xf32>
    %128 = math.tanh %127 : vector<8x32xf32>
    %129 = arith.mulf %124, %128 : vector<8x32xf32>
    %130 = vector.broadcast %c2_i32 : i32 to vector<8x1xi32>
    %131 = arith.cmpi slt, %130, %10 : vector<8x1xi32>
    %132 = arith.extui %131 : vector<8x1xi1> to vector<8x1xi32>
    %133 = arith.sitofp %132 : vector<8x1xi32> to vector<8x1xf32>
    %134 = vector.broadcast %133 : vector<8x1xf32> to vector<8x32xf32>
    %135 = arith.mulf %134, %129 : vector<8x32xf32>
    %cst_35 = arith.constant 1.000000e+00 : f32
    %136 = vector.broadcast %cst_35 : f32 to vector<8x1xf32>
    %137 = arith.subf %136, %133 : vector<8x1xf32>
    %138 = vector.broadcast %137 : vector<8x1xf32> to vector<8x32xf32>
    %139 = arith.mulf %138, %95 : vector<8x32xf32>
    %140 = arith.addf %135, %139 : vector<8x32xf32>
    %141 = vector.broadcast %133 : vector<8x1xf32> to vector<8x32xf32>
    %142 = arith.mulf %141, %127 : vector<8x32xf32>
    %cst_36 = arith.constant 1.000000e+00 : f32
    %143 = vector.broadcast %cst_36 : f32 to vector<8x1xf32>
    %144 = arith.subf %143, %133 : vector<8x1xf32>
    %145 = vector.broadcast %144 : vector<8x1xf32> to vector<8x32xf32>
    %146 = arith.mulf %145, %102 : vector<8x32xf32>
    %147 = arith.addf %142, %146 : vector<8x32xf32>
    %148 = vector.broadcast %133 : vector<8x1xf32> to vector<8x32xf32>
    %149 = arith.mulf %148, %129 : vector<8x32xf32>
    %150 = arith.index_cast %c2_i32 : i32 to index
    %c0_37 = arith.constant 0 : index
    %c0_38 = arith.constant 0 : index
    %151 = vector.load %arg6[%150, %c0_37, %c0_38] : memref<8x8x32xf32, #tpu.memory_space<vmem>>, vector<1x8x32xf32>
    %152 = vector.shape_cast %151 : vector<1x8x32xf32> to vector<8x32xf32>
    %153 = vector.shape_cast %149 : vector<8x32xf32> to vector<1x8x32xf32>
    tpu.vector_store %arg6[%150, %c0_37, %c0_38], %153 {strides = array<i32>} : memref<8x8x32xf32, #tpu.memory_space<vmem>>, vector<1x8x32xf32>,
    %c3_i32 = arith.constant 3 : i32
    %154 = arith.index_cast %c3_i32 : i32 to index
    %c0_39 = arith.constant 0 : index
    %c0_40 = arith.constant 0 : index
    %155 = vector.load %arg9[%154, %c0_39, %c0_40] : memref<8x8x128xf32, #tpu.memory_space<vmem>>, vector<1x8x128xf32>
    %156 = vector.shape_cast %155 : vector<1x8x128xf32> to vector<8x128xf32>
    %cst_41 = arith.constant dense<0.000000e+00> : vector<8x128xf32>
    %157 = tpu.matmul %140, %9, %cst_41 {dimension_numbers = #tpu.dot_dimension_numbers<[1], [0], [0], [1], [0, 0, 1, 1], [], []>} : vector<8x32xf32>, vector<32x128xf32>, vector<8x128xf32> -> vector<8x128xf32>
    %158 = arith.addf %156, %157 : vector<8x128xf32>
    %159 = math.tanh %158 : vector<8x128xf32>
    %160 = arith.negf %158 : vector<8x128xf32>
    %161 = math.exp %160 : vector<8x128xf32>
    %cst_42 = arith.constant 1.000000e+00 : f32
    %162 = vector.broadcast %cst_42 : f32 to vector<8x128xf32>
    %163 = arith.addf %162, %161 : vector<8x128xf32>
    %164 = arith.divf %162, %163 : vector<8x128xf32>
    %165 = arith.select %16, %159, %164 : vector<8x128xi1>, vector<8x128xf32>
    %166 = vector.extract_strided_slice %165 {offsets = [0, 0], sizes = [8, 32], strides = [1, 1]} : vector<8x128xf32> to vector<8x32xf32>
    %167 = vector.extract_strided_slice %165 {offsets = [0, 32], sizes = [8, 32], strides = [1, 1]} : vector<8x128xf32> to vector<8x32xf32>
    %168 = vector.extract_strided_slice %165 {offsets = [0, 64], sizes = [8, 32], strides = [1, 1]} : vector<8x128xf32> to vector<8x32xf32>
    %169 = vector.extract_strided_slice %165 {offsets = [0, 96], sizes = [8, 32], strides = [1, 1]} : vector<8x128xf32> to vector<8x32xf32>
    %170 = arith.mulf %167, %147 : vector<8x32xf32>
    %171 = arith.mulf %166, %168 : vector<8x32xf32>
    %172 = arith.addf %170, %171 : vector<8x32xf32>
    %173 = math.tanh %172 : vector<8x32xf32>
    %174 = arith.mulf %169, %173 : vector<8x32xf32>
    %175 = vector.broadcast %c3_i32 : i32 to vector<8x1xi32>
    %176 = arith.cmpi slt, %175, %10 : vector<8x1xi32>
    %177 = arith.extui %176 : vector<8x1xi1> to vector<8x1xi32>
    %178 = arith.sitofp %177 : vector<8x1xi32> to vector<8x1xf32>
    %179 = vector.broadcast %178 : vector<8x1xf32> to vector<8x32xf32>
    %180 = arith.mulf %179, %174 : vector<8x32xf32>
    %cst_43 = arith.constant 1.000000e+00 : f32
    %181 = vector.broadcast %cst_43 : f32 to vector<8x1xf32>
    %182 = arith.subf %181, %178 : vector<8x1xf32>
    %183 = vector.broadcast %182 : vector<8x1xf32> to vector<8x32xf32>
    %184 = arith.mulf %183, %140 : vector<8x32xf32>
    %185 = arith.addf %180, %184 : vector<8x32xf32>
    %186 = vector.broadcast %178 : vector<8x1xf32> to vector<8x32xf32>
    %187 = arith.mulf %186, %172 : vector<8x32xf32>
    %cst_44 = arith.constant 1.000000e+00 : f32
    %188 = vector.broadcast %cst_44 : f32 to vector<8x1xf32>
    %189 = arith.subf %188, %178 : vector<8x1xf32>
    %190 = vector.broadcast %189 : vector<8x1xf32> to vector<8x32xf32>
    %191 = arith.mulf %190, %147 : vector<8x32xf32>
    %192 = arith.addf %187, %191 : vector<8x32xf32>
    %193 = vector.broadcast %178 : vector<8x1xf32> to vector<8x32xf32>
    %194 = arith.mulf %193, %174 : vector<8x32xf32>
    %195 = arith.index_cast %c3_i32 : i32 to index
    %c0_45 = arith.constant 0 : index
    %c0_46 = arith.constant 0 : index
    %196 = vector.load %arg6[%195, %c0_45, %c0_46] : memref<8x8x32xf32, #tpu.memory_space<vmem>>, vector<1x8x32xf32>
    %197 = vector.shape_cast %196 : vector<1x8x32xf32> to vector<8x32xf32>
    %198 = vector.shape_cast %194 : vector<8x32xf32> to vector<1x8x32xf32>
    tpu.vector_store %arg6[%195, %c0_45, %c0_46], %198 {strides = array<i32>} : memref<8x8x32xf32, #tpu.memory_space<vmem>>, vector<1x8x32xf32>,
    %c4_i32 = arith.constant 4 : i32
    %199 = arith.index_cast %c4_i32 : i32 to index
    %c0_47 = arith.constant 0 : index
    %c0_48 = arith.constant 0 : index
    %200 = vector.load %arg9[%199, %c0_47, %c0_48] : memref<8x8x128xf32, #tpu.memory_space<vmem>>, vector<1x8x128xf32>
    %201 = vector.shape_cast %200 : vector<1x8x128xf32> to vector<8x128xf32>
    %cst_49 = arith.constant dense<0.000000e+00> : vector<8x128xf32>
    %202 = tpu.matmul %185, %9, %cst_49 {dimension_numbers = #tpu.dot_dimension_numbers<[1], [0], [0], [1], [0, 0, 1, 1], [], []>} : vector<8x32xf32>, vector<32x128xf32>, vector<8x128xf32> -> vector<8x128xf32>
    %203 = arith.addf %201, %202 : vector<8x128xf32>
    %204 = math.tanh %203 : vector<8x128xf32>
    %205 = arith.negf %203 : vector<8x128xf32>
    %206 = math.exp %205 : vector<8x128xf32>
    %cst_50 = arith.constant 1.000000e+00 : f32
    %207 = vector.broadcast %cst_50 : f32 to vector<8x128xf32>
    %208 = arith.addf %207, %206 : vector<8x128xf32>
    %209 = arith.divf %207, %208 : vector<8x128xf32>
    %210 = arith.select %16, %204, %209 : vector<8x128xi1>, vector<8x128xf32>
    %211 = vector.extract_strided_slice %210 {offsets = [0, 0], sizes = [8, 32], strides = [1, 1]} : vector<8x128xf32> to vector<8x32xf32>
    %212 = vector.extract_strided_slice %210 {offsets = [0, 32], sizes = [8, 32], strides = [1, 1]} : vector<8x128xf32> to vector<8x32xf32>
    %213 = vector.extract_strided_slice %210 {offsets = [0, 64], sizes = [8, 32], strides = [1, 1]} : vector<8x128xf32> to vector<8x32xf32>
    %214 = vector.extract_strided_slice %210 {offsets = [0, 96], sizes = [8, 32], strides = [1, 1]} : vector<8x128xf32> to vector<8x32xf32>
    %215 = arith.mulf %212, %192 : vector<8x32xf32>
    %216 = arith.mulf %211, %213 : vector<8x32xf32>
    %217 = arith.addf %215, %216 : vector<8x32xf32>
    %218 = math.tanh %217 : vector<8x32xf32>
    %219 = arith.mulf %214, %218 : vector<8x32xf32>
    %220 = vector.broadcast %c4_i32 : i32 to vector<8x1xi32>
    %221 = arith.cmpi slt, %220, %10 : vector<8x1xi32>
    %222 = arith.extui %221 : vector<8x1xi1> to vector<8x1xi32>
    %223 = arith.sitofp %222 : vector<8x1xi32> to vector<8x1xf32>
    %224 = vector.broadcast %223 : vector<8x1xf32> to vector<8x32xf32>
    %225 = arith.mulf %224, %219 : vector<8x32xf32>
    %cst_51 = arith.constant 1.000000e+00 : f32
    %226 = vector.broadcast %cst_51 : f32 to vector<8x1xf32>
    %227 = arith.subf %226, %223 : vector<8x1xf32>
    %228 = vector.broadcast %227 : vector<8x1xf32> to vector<8x32xf32>
    %229 = arith.mulf %228, %185 : vector<8x32xf32>
    %230 = arith.addf %225, %229 : vector<8x32xf32>
    %231 = vector.broadcast %223 : vector<8x1xf32> to vector<8x32xf32>
    %232 = arith.mulf %231, %217 : vector<8x32xf32>
    %cst_52 = arith.constant 1.000000e+00 : f32
    %233 = vector.broadcast %cst_52 : f32 to vector<8x1xf32>
    %234 = arith.subf %233, %223 : vector<8x1xf32>
    %235 = vector.broadcast %234 : vector<8x1xf32> to vector<8x32xf32>
    %236 = arith.mulf %235, %192 : vector<8x32xf32>
    %237 = arith.addf %232, %236 : vector<8x32xf32>
    %238 = vector.broadcast %223 : vector<8x1xf32> to vector<8x32xf32>
    %239 = arith.mulf %238, %219 : vector<8x32xf32>
    %240 = arith.index_cast %c4_i32 : i32 to index
    %c0_53 = arith.constant 0 : index
    %c0_54 = arith.constant 0 : index
    %241 = vector.load %arg6[%240, %c0_53, %c0_54] : memref<8x8x32xf32, #tpu.memory_space<vmem>>, vector<1x8x32xf32>
    %242 = vector.shape_cast %241 : vector<1x8x32xf32> to vector<8x32xf32>
    %243 = vector.shape_cast %239 : vector<8x32xf32> to vector<1x8x32xf32>
    tpu.vector_store %arg6[%240, %c0_53, %c0_54], %243 {strides = array<i32>} : memref<8x8x32xf32, #tpu.memory_space<vmem>>, vector<1x8x32xf32>,
    %c5_i32 = arith.constant 5 : i32
    %244 = arith.index_cast %c5_i32 : i32 to index
    %c0_55 = arith.constant 0 : index
    %c0_56 = arith.constant 0 : index
    %245 = vector.load %arg9[%244, %c0_55, %c0_56] : memref<8x8x128xf32, #tpu.memory_space<vmem>>, vector<1x8x128xf32>
    %246 = vector.shape_cast %245 : vector<1x8x128xf32> to vector<8x128xf32>
    %cst_57 = arith.constant dense<0.000000e+00> : vector<8x128xf32>
    %247 = tpu.matmul %230, %9, %cst_57 {dimension_numbers = #tpu.dot_dimension_numbers<[1], [0], [0], [1], [0, 0, 1, 1], [], []>} : vector<8x32xf32>, vector<32x128xf32>, vector<8x128xf32> -> vector<8x128xf32>
    %248 = arith.addf %246, %247 : vector<8x128xf32>
    %249 = math.tanh %248 : vector<8x128xf32>
    %250 = arith.negf %248 : vector<8x128xf32>
    %251 = math.exp %250 : vector<8x128xf32>
    %cst_58 = arith.constant 1.000000e+00 : f32
    %252 = vector.broadcast %cst_58 : f32 to vector<8x128xf32>
    %253 = arith.addf %252, %251 : vector<8x128xf32>
    %254 = arith.divf %252, %253 : vector<8x128xf32>
    %255 = arith.select %16, %249, %254 : vector<8x128xi1>, vector<8x128xf32>
    %256 = vector.extract_strided_slice %255 {offsets = [0, 0], sizes = [8, 32], strides = [1, 1]} : vector<8x128xf32> to vector<8x32xf32>
    %257 = vector.extract_strided_slice %255 {offsets = [0, 32], sizes = [8, 32], strides = [1, 1]} : vector<8x128xf32> to vector<8x32xf32>
    %258 = vector.extract_strided_slice %255 {offsets = [0, 64], sizes = [8, 32], strides = [1, 1]} : vector<8x128xf32> to vector<8x32xf32>
    %259 = vector.extract_strided_slice %255 {offsets = [0, 96], sizes = [8, 32], strides = [1, 1]} : vector<8x128xf32> to vector<8x32xf32>
    %260 = arith.mulf %257, %237 : vector<8x32xf32>
    %261 = arith.mulf %256, %258 : vector<8x32xf32>
    %262 = arith.addf %260, %261 : vector<8x32xf32>
    %263 = math.tanh %262 : vector<8x32xf32>
    %264 = arith.mulf %259, %263 : vector<8x32xf32>
    %265 = vector.broadcast %c5_i32 : i32 to vector<8x1xi32>
    %266 = arith.cmpi slt, %265, %10 : vector<8x1xi32>
    %267 = arith.extui %266 : vector<8x1xi1> to vector<8x1xi32>
    %268 = arith.sitofp %267 : vector<8x1xi32> to vector<8x1xf32>
    %269 = vector.broadcast %268 : vector<8x1xf32> to vector<8x32xf32>
    %270 = arith.mulf %269, %264 : vector<8x32xf32>
    %cst_59 = arith.constant 1.000000e+00 : f32
    %271 = vector.broadcast %cst_59 : f32 to vector<8x1xf32>
    %272 = arith.subf %271, %268 : vector<8x1xf32>
    %273 = vector.broadcast %272 : vector<8x1xf32> to vector<8x32xf32>
    %274 = arith.mulf %273, %230 : vector<8x32xf32>
    %275 = arith.addf %270, %274 : vector<8x32xf32>
    %276 = vector.broadcast %268 : vector<8x1xf32> to vector<8x32xf32>
    %277 = arith.mulf %276, %262 : vector<8x32xf32>
    %cst_60 = arith.constant 1.000000e+00 : f32
    %278 = vector.broadcast %cst_60 : f32 to vector<8x1xf32>
    %279 = arith.subf %278, %268 : vector<8x1xf32>
    %280 = vector.broadcast %279 : vector<8x1xf32> to vector<8x32xf32>
    %281 = arith.mulf %280, %237 : vector<8x32xf32>
    %282 = arith.addf %277, %281 : vector<8x32xf32>
    %283 = vector.broadcast %268 : vector<8x1xf32> to vector<8x32xf32>
    %284 = arith.mulf %283, %264 : vector<8x32xf32>
    %285 = arith.index_cast %c5_i32 : i32 to index
    %c0_61 = arith.constant 0 : index
    %c0_62 = arith.constant 0 : index
    %286 = vector.load %arg6[%285, %c0_61, %c0_62] : memref<8x8x32xf32, #tpu.memory_space<vmem>>, vector<1x8x32xf32>
    %287 = vector.shape_cast %286 : vector<1x8x32xf32> to vector<8x32xf32>
    %288 = vector.shape_cast %284 : vector<8x32xf32> to vector<1x8x32xf32>
    tpu.vector_store %arg6[%285, %c0_61, %c0_62], %288 {strides = array<i32>} : memref<8x8x32xf32, #tpu.memory_space<vmem>>, vector<1x8x32xf32>,
    %c6_i32 = arith.constant 6 : i32
    %289 = arith.index_cast %c6_i32 : i32 to index
    %c0_63 = arith.constant 0 : index
    %c0_64 = arith.constant 0 : index
    %290 = vector.load %arg9[%289, %c0_63, %c0_64] : memref<8x8x128xf32, #tpu.memory_space<vmem>>, vector<1x8x128xf32>
    %291 = vector.shape_cast %290 : vector<1x8x128xf32> to vector<8x128xf32>
    %cst_65 = arith.constant dense<0.000000e+00> : vector<8x128xf32>
    %292 = tpu.matmul %275, %9, %cst_65 {dimension_numbers = #tpu.dot_dimension_numbers<[1], [0], [0], [1], [0, 0, 1, 1], [], []>} : vector<8x32xf32>, vector<32x128xf32>, vector<8x128xf32> -> vector<8x128xf32>
    %293 = arith.addf %291, %292 : vector<8x128xf32>
    %294 = math.tanh %293 : vector<8x128xf32>
    %295 = arith.negf %293 : vector<8x128xf32>
    %296 = math.exp %295 : vector<8x128xf32>
    %cst_66 = arith.constant 1.000000e+00 : f32
    %297 = vector.broadcast %cst_66 : f32 to vector<8x128xf32>
    %298 = arith.addf %297, %296 : vector<8x128xf32>
    %299 = arith.divf %297, %298 : vector<8x128xf32>
    %300 = arith.select %16, %294, %299 : vector<8x128xi1>, vector<8x128xf32>
    %301 = vector.extract_strided_slice %300 {offsets = [0, 0], sizes = [8, 32], strides = [1, 1]} : vector<8x128xf32> to vector<8x32xf32>
    %302 = vector.extract_strided_slice %300 {offsets = [0, 32], sizes = [8, 32], strides = [1, 1]} : vector<8x128xf32> to vector<8x32xf32>
    %303 = vector.extract_strided_slice %300 {offsets = [0, 64], sizes = [8, 32], strides = [1, 1]} : vector<8x128xf32> to vector<8x32xf32>
    %304 = vector.extract_strided_slice %300 {offsets = [0, 96], sizes = [8, 32], strides = [1, 1]} : vector<8x128xf32> to vector<8x32xf32>
    %305 = arith.mulf %302, %282 : vector<8x32xf32>
    %306 = arith.mulf %301, %303 : vector<8x32xf32>
    %307 = arith.addf %305, %306 : vector<8x32xf32>
    %308 = math.tanh %307 : vector<8x32xf32>
    %309 = arith.mulf %304, %308 : vector<8x32xf32>
    %310 = vector.broadcast %c6_i32 : i32 to vector<8x1xi32>
    %311 = arith.cmpi slt, %310, %10 : vector<8x1xi32>
    %312 = arith.extui %311 : vector<8x1xi1> to vector<8x1xi32>
    %313 = arith.sitofp %312 : vector<8x1xi32> to vector<8x1xf32>
    %314 = vector.broadcast %313 : vector<8x1xf32> to vector<8x32xf32>
    %315 = arith.mulf %314, %309 : vector<8x32xf32>
    %cst_67 = arith.constant 1.000000e+00 : f32
    %316 = vector.broadcast %cst_67 : f32 to vector<8x1xf32>
    %317 = arith.subf %316, %313 : vector<8x1xf32>
    %318 = vector.broadcast %317 : vector<8x1xf32> to vector<8x32xf32>
    %319 = arith.mulf %318, %275 : vector<8x32xf32>
    %320 = arith.addf %315, %319 : vector<8x32xf32>
    %321 = vector.broadcast %313 : vector<8x1xf32> to vector<8x32xf32>
    %322 = arith.mulf %321, %307 : vector<8x32xf32>
    %cst_68 = arith.constant 1.000000e+00 : f32
    %323 = vector.broadcast %cst_68 : f32 to vector<8x1xf32>
    %324 = arith.subf %323, %313 : vector<8x1xf32>
    %325 = vector.broadcast %324 : vector<8x1xf32> to vector<8x32xf32>
    %326 = arith.mulf %325, %282 : vector<8x32xf32>
    %327 = arith.addf %322, %326 : vector<8x32xf32>
    %328 = vector.broadcast %313 : vector<8x1xf32> to vector<8x32xf32>
    %329 = arith.mulf %328, %309 : vector<8x32xf32>
    %330 = arith.index_cast %c6_i32 : i32 to index
    %c0_69 = arith.constant 0 : index
    %c0_70 = arith.constant 0 : index
    %331 = vector.load %arg6[%330, %c0_69, %c0_70] : memref<8x8x32xf32, #tpu.memory_space<vmem>>, vector<1x8x32xf32>
    %332 = vector.shape_cast %331 : vector<1x8x32xf32> to vector<8x32xf32>
    %333 = vector.shape_cast %329 : vector<8x32xf32> to vector<1x8x32xf32>
    tpu.vector_store %arg6[%330, %c0_69, %c0_70], %333 {strides = array<i32>} : memref<8x8x32xf32, #tpu.memory_space<vmem>>, vector<1x8x32xf32>,
    %c7_i32 = arith.constant 7 : i32
    %334 = arith.index_cast %c7_i32 : i32 to index
    %c0_71 = arith.constant 0 : index
    %c0_72 = arith.constant 0 : index
    %335 = vector.load %arg9[%334, %c0_71, %c0_72] : memref<8x8x128xf32, #tpu.memory_space<vmem>>, vector<1x8x128xf32>
    %336 = vector.shape_cast %335 : vector<1x8x128xf32> to vector<8x128xf32>
    %cst_73 = arith.constant dense<0.000000e+00> : vector<8x128xf32>
    %337 = tpu.matmul %320, %9, %cst_73 {dimension_numbers = #tpu.dot_dimension_numbers<[1], [0], [0], [1], [0, 0, 1, 1], [], []>} : vector<8x32xf32>, vector<32x128xf32>, vector<8x128xf32> -> vector<8x128xf32>
    %338 = arith.addf %336, %337 : vector<8x128xf32>
    %339 = math.tanh %338 : vector<8x128xf32>
    %340 = arith.negf %338 : vector<8x128xf32>
    %341 = math.exp %340 : vector<8x128xf32>
    %cst_74 = arith.constant 1.000000e+00 : f32
    %342 = vector.broadcast %cst_74 : f32 to vector<8x128xf32>
    %343 = arith.addf %342, %341 : vector<8x128xf32>
    %344 = arith.divf %342, %343 : vector<8x128xf32>
    %345 = arith.select %16, %339, %344 : vector<8x128xi1>, vector<8x128xf32>
    %346 = vector.extract_strided_slice %345 {offsets = [0, 0], sizes = [8, 32], strides = [1, 1]} : vector<8x128xf32> to vector<8x32xf32>
    %347 = vector.extract_strided_slice %345 {offsets = [0, 32], sizes = [8, 32], strides = [1, 1]} : vector<8x128xf32> to vector<8x32xf32>
    %348 = vector.extract_strided_slice %345 {offsets = [0, 64], sizes = [8, 32], strides = [1, 1]} : vector<8x128xf32> to vector<8x32xf32>
    %349 = vector.extract_strided_slice %345 {offsets = [0, 96], sizes = [8, 32], strides = [1, 1]} : vector<8x128xf32> to vector<8x32xf32>
    %350 = arith.mulf %347, %327 : vector<8x32xf32>
    %351 = arith.mulf %346, %348 : vector<8x32xf32>
    %352 = arith.addf %350, %351 : vector<8x32xf32>
    %353 = math.tanh %352 : vector<8x32xf32>
    %354 = arith.mulf %349, %353 : vector<8x32xf32>
    %355 = vector.broadcast %c7_i32 : i32 to vector<8x1xi32>
    %356 = arith.cmpi slt, %355, %10 : vector<8x1xi32>
    %357 = arith.extui %356 : vector<8x1xi1> to vector<8x1xi32>
    %358 = arith.sitofp %357 : vector<8x1xi32> to vector<8x1xf32>
    %359 = vector.broadcast %358 : vector<8x1xf32> to vector<8x32xf32>
    %360 = arith.mulf %359, %354 : vector<8x32xf32>
    %cst_75 = arith.constant 1.000000e+00 : f32
    %361 = vector.broadcast %cst_75 : f32 to vector<8x1xf32>
    %362 = arith.subf %361, %358 : vector<8x1xf32>
    %363 = vector.broadcast %362 : vector<8x1xf32> to vector<8x32xf32>
    %364 = arith.mulf %363, %320 : vector<8x32xf32>
    %365 = arith.addf %360, %364 : vector<8x32xf32>
    %366 = vector.broadcast %358 : vector<8x1xf32> to vector<8x32xf32>
    %367 = arith.mulf %366, %352 : vector<8x32xf32>
    %cst_76 = arith.constant 1.000000e+00 : f32
    %368 = vector.broadcast %cst_76 : f32 to vector<8x1xf32>
    %369 = arith.subf %368, %358 : vector<8x1xf32>
    %370 = vector.broadcast %369 : vector<8x1xf32> to vector<8x32xf32>
    %371 = arith.mulf %370, %327 : vector<8x32xf32>
    %372 = arith.addf %367, %371 : vector<8x32xf32>
    %373 = vector.broadcast %358 : vector<8x1xf32> to vector<8x32xf32>
    %374 = arith.mulf %373, %354 : vector<8x32xf32>
    %375 = arith.index_cast %c7_i32 : i32 to index
    %c0_77 = arith.constant 0 : index
    %c0_78 = arith.constant 0 : index
    %376 = vector.load %arg6[%375, %c0_77, %c0_78] : memref<8x8x32xf32, #tpu.memory_space<vmem>>, vector<1x8x32xf32>
    %377 = vector.shape_cast %376 : vector<1x8x32xf32> to vector<8x32xf32>
    %378 = vector.shape_cast %374 : vector<8x32xf32> to vector<1x8x32xf32>
    tpu.vector_store %arg6[%375, %c0_77, %c0_78], %378 {strides = array<i32>} : memref<8x8x32xf32, #tpu.memory_space<vmem>>, vector<1x8x32xf32>,
    %c8_i32 = arith.constant 8 : i32
    %c0_79 = arith.constant 0 : index
    %c0_80 = arith.constant 0 : index
    %379 = vector.load %arg7[%c0_79, %c0_80] : memref<8x32xf32, #tpu.memory_space<vmem>>, vector<8x32xf32>
    tpu.vector_store %arg7[%c0_79, %c0_80], %365 {strides = array<i32>} : memref<8x32xf32, #tpu.memory_space<vmem>>, vector<8x32xf32>,
    %c0_81 = arith.constant 0 : index
    %c0_82 = arith.constant 0 : index
    %380 = vector.load %arg8[%c0_81, %c0_82] : memref<8x32xf32, #tpu.memory_space<vmem>>, vector<8x32xf32>
    tpu.vector_store %arg8[%c0_81, %c0_82], %372 {strides = array<i32>} : memref<8x32xf32, #tpu.memory_space<vmem>>, vector<8x32xf32>,
    return
  }
  func.func @transform_0(%arg0: i32) -> (i32, i32) {
    %c0_i32 = arith.constant 0 : i32
    %c0_i32_0 = arith.constant 0 : i32
    return %arg0, %c0_i32 : i32, i32
  }
  func.func @transform_1(%arg0: i32) -> (i32, i32, i32) {
    %c0_i32 = arith.constant 0 : i32
    %c0_i32_0 = arith.constant 0 : i32
    %c0_i32_1 = arith.constant 0 : i32
    return %c0_i32, %arg0, %c0_i32_0 : i32, i32, i32
  }
  func.func @transform_2(%arg0: i32) -> (i32, i32) {
    %c0_i32 = arith.constant 0 : i32
    %c0_i32_0 = arith.constant 0 : i32
    %c0_i32_1 = arith.constant 0 : i32
    return %c0_i32, %c0_i32_0 : i32, i32
  }
  func.func @transform_3(%arg0: i32) -> (i32, i32) {
    %c0_i32 = arith.constant 0 : i32
    %c0_i32_0 = arith.constant 0 : i32
    %c0_i32_1 = arith.constant 0 : i32
    return %c0_i32, %c0_i32_0 : i32, i32
  }
  func.func @transform_4(%arg0: i32) -> (i32, i32) {
    %c0_i32 = arith.constant 0 : i32
    %c0_i32_0 = arith.constant 0 : i32
    %c0_i32_1 = arith.constant 0 : i32
    return %c0_i32, %c0_i32_0 : i32, i32
  }
  func.func @transform_5(%arg0: i32) -> (i32, i32, i32) {
    %c0_i32 = arith.constant 0 : i32
    %c0_i32_0 = arith.constant 0 : i32
    %c0_i32_1 = arith.constant 0 : i32
    return %c0_i32, %arg0, %c0_i32_0 : i32, i32, i32
  }
  func.func @transform_6(%arg0: i32) -> (i32, i32) {
    %c0_i32 = arith.constant 0 : i32
    %c0_i32_0 = arith.constant 0 : i32
    return %arg0, %c0_i32 : i32, i32
  }
  func.func @transform_7(%arg0: i32) -> (i32, i32) {
    %c0_i32 = arith.constant 0 : i32
    %c0_i32_0 = arith.constant 0 : i32
    return %arg0, %c0_i32 : i32, i32
  }
}

</mosaic_0001>

<bundles_post_ra>
// kernel: tpu_custom_call.1
= control target key start
LH: loop header
LB: loop body
LE: loop exit
PB: predicated region body
PF: predicated region fallthrough
CT: control target
= control target key end

     0   :  { %13 = vsyncpa [#allocation4], 0  ;;  %s2085_s0 = inlined_call_operand.vmem [shape: s32[8,1], index: 0, kind: input, shape index: {}]   ;;  %s2086_s1 = inlined_call_operand.hbm [shape: f32[8,8,16], index: 1, kind: input, shape index: {}]   ;;  %s2087_s2 = inlined_call_operand.vmem [shape: f32[16,128], index: 2, kind: input, shape index: {}]   ;;  %s2088_s3 = inlined_call_operand.hbm [shape: f32[32,128], index: 3, kind: input, shape index: {}]   ;;  %s2089_s4 = inlined_call_operand.vmem [shape: f32[1,128], index: 4, kind: input, shape index: {}]   ;;  %s2090_s5 = inlined_call_operand.hbm [shape: f32[8,8,32], index: 5, kind: output, shape index: {0}]   ;;  %s2091_s6 = inlined_call_operand.hbm [shape: f32[8,32], index: 6, kind: output, shape index: {1}]   ;;  %s2092_s7 = inlined_call_operand.hbm [shape: f32[8,32], index: 7, kind: output, shape index: {2}]  }
   0x1   :  { %14 = vsyncpa [#allocation7], 0 }
   0x2   :  { %15 = vsyncpa [#allocation5], 0 }
   0x3   :  { %16 = vsyncpa [#allocation10], 0  ;;  %s1737_s24 = smov [#allocation3]   ;;  %s1619_s28 = scalar_lea.hbm %s2086_s1, 1024 }
   0x4   :  { %s24_s25 = sshll.u32 %s1737_s24, 4  ;;  %p1620_p0 = scmp.ne.s32.totalorder %s2086_s1, %s1619_s28  ;;  %s25_s25 = int_to_ptr.vmem [resolvable:$true] %s24_s25 }
   0x5   :  { %p1623_p1 = scmp.lt.u32.totalorder %s1619_s28, %s2086_s1 }
   0x7   :  { %p1625_p2 = pnand %p1623_p1, %p1620_p0 }
   0x9   :  { %1628 = shalt.err (!%p1625_p2)
}
   0xa   :  { %s1629_s10 = scalar_lea.vmem %s25_s25, 1024  ;;  %p1634_p4 = scmp.lt.s32.totalorder %s25_s25, %s25_s25 }
   0xb   :  { %p1630_p3 = scmp.ne.s32.totalorder %s25_s25, %s1629_s10  ;;  %p1635_p5 = scmp.lt.s32.totalorder %s1629_s10, %s1629_s10 }
   0xd   :  { %p1636_p6 = por %p1635_p5, %p1634_p4 }
   0xf   :  { %p1637_p7 = pnand %p1636_p6, %p1630_p3 }
  0x11   :  { %1640 = shalt.err (!%p1637_p7)
}
  0x12   :  { %s1738_s11 = smov 128   ;;  %s1739_s12 = smov 8  }
  0x13   :  { %30 = dma.hbm_to_vmem [thread:$0]  %s2086_s1, 1024, %s25_s25, [#allocation4], %s1738_s11, %s1738_s11, %s1739_s12  }
  0x14   :  { %s1740_s15 = smov [#allocation6]   ;;  %s1641_s19 = scalar_lea.hbm %s2088_s3, 512 }
  0x15   :  { %s38_s16 = sshll.u32 %s1740_s15, 4  ;;  %p1642_p8 = scmp.ne.s32.totalorder %s2088_s3, %s1641_s19  ;;  %s39_s16 = int_to_ptr.vmem [resolvable:$true] %s38_s16 }
  0x16   :  { %p1645_p9 = scmp.lt.u32.totalorder %s1641_s19, %s2088_s3 }
  0x18   :  { %p1647_p10 = pnand %p1645_p9, %p1642_p8 }
  0x1a   :  { %1650 = shalt.err (!%p1647_p10)
}
  0x1b   :  { %s1651_s24 = scalar_lea.vmem %s39_s16, 512  ;;  %p1656_p12 = scmp.lt.s32.totalorder %s39_s16, %s39_s16 }
  0x1c   :  { %p1652_p11 = scmp.ne.s32.totalorder %s39_s16, %s1651_s24  ;;  %p1657_p13 = scmp.lt.s32.totalorder %s1651_s24, %s1651_s24 }
  0x1e   :  { %p1658_p0 = por %p1657_p13, %p1656_p12 }
  0x20   :  { %p1659_p1 = pnand %p1658_p0, %p1652_p11 }
  0x22   :  { %1662 = shalt.err (!%p1659_p1)
}
  0x23   :  { %44 = dma.hbm_to_vmem [thread:$0]  %s2088_s3, 512, %s39_s16, [#allocation7], %s1738_s11, %s1738_s11, %s1739_s12  }
  0x24   :  { %1729 = dma.done.wait [#allocation4], 1024  }
  0x25   :  { %1730 = vsyncadd [#allocation4], 4294966272 }
  0x26   :  { %1731 = dma.done.wait [#allocation7], 512  }
  0x27   :  { %1732 = vsyncadd [#allocation7], 4294966784  ;;  %v1741_v0 = vmov 0.0|0.0   ;;  %vm1742_vm0 = vmmov 0   ;;  %v1743_v1 = vmov 0.0   ;;  %vm70_vm1 = vcmask 130048  }
  0x28   :  { %1491 = vmatprep.subr.bf16.mxu1 %v1741_v0  ;;  %1407 = vmatprep.mubr.msk.f32.mxu1 %vm1742_vm0, %v1743_v1  ;;  %v61_v2 = vld [vmem:[%s2087_s2] sm:$0xff]  ;;  %v62_v3 = vld [vmem:[%s2087_s2 + $0x8] sm:$0xff]  ;;  %v208_v4 = vld [vmem:[#allocation6] sm:$0xff]  ;;  %v1744_v14 = vmov 0   ;;  %v213_v26 = vlaneseq  ;;  %vm219_vm6 = vcmask 261120   ;;  %s1747_s9 = smov 96  }
  0x29   :  { %v1487_v5 = vpack.c.bf16 %v62_v3, %v61_v2  ;;  %v209_v6 = vld [vmem:[#allocation6 + $0x8] sm:$0xff]  ;;  %v53_v7 = vld [vmem:[#allocation3] sm:$0xff]  ;;  %v210_v9 = vld [vmem:[#allocation6 + $0x10] sm:$0xff]  ;;  %1553 = vset.pattern.permute.xlu1 %v1744_v14  ;;  %1554 = vset.pattern.permute.xlu0 %v1744_v14  ;;  %s1748_s10 = smov [#allocation9]   ;;  %s1749_s14 = smov [#allocation11]  }
  0x2a   :  { %v1830_v8 = vpack.c.bf16 %v209_v6, %v208_v4  ;;  %1387 = vmatprep.mubr.msk.f32.mxu0 %vm70_vm1, %v53_v7  ;;  %v211_v10 = vld [vmem:[#allocation6 + $0x18] sm:$0xff]  ;;  %v54_v11 = vld [vmem:[#allocation3 + $0x8] sm:$0xff]  ;;  %v214_v28 = vand.u32 127, %v213_v26  ;;  %v55_v4 = vld [vmem:[#allocation3 + $0x10] sm:$0xff]  ;;  %s1274_s13 = sshll.u32 %s1748_s10, 4  ;;  %s1284_s15 = sshll.u32 %s1749_s14, 4  ;;  %s1275_s13 = int_to_ptr.vmem [resolvable:$true] %s1274_s13  ;;  %s1285_s15 = int_to_ptr.vmem [resolvable:$true] %s1284_s15 }
  0x2b   :  { %1488 = vmatprep.subr.bf16.mxu0 %v1487_v5  ;;  %v1834_v12 = vpack.c.bf16 %v211_v10, %v210_v9  ;;  %v1855_v13 = vld [vmem:[%s2085_s0] sm:$0xff]  ;;  %s1745_s0 = smov 64   ;;  %v57_v6 = vld [vmem:[#allocation3 + $0x20] sm:$0xff]  ;;  %v59_v9 = vld [vmem:[#allocation3 + $0x30] sm:$0xff]  ;;  %s1750_s16 = smov [#allocation8]  }
  0x2c   :  { %1493 = vmatpush3.bf16.msra.mxu1 %v1830_v8  ;;  %1490 = vmatpush3.bf16.msra.mxu0 %v1487_v5  ;;  %vm319_vm2 = vcmp.gt.s32.totalorder %v1855_v13, 0  ;;  %v1862_v17 = vld [vmem:[%s2089_s4] ss:$0 sm:$0xff]  ;;  %vm215_vm3 = vcmp.ge.s32.totalorder %v214_v28, 64  ;;  %vm216_vm4 = vcmp.lt.s32.totalorder %v214_v28, 96  ;;  %s1746_s4 = smov 32   ;;  %p1668_p3 = scmp.lt.s32.totalorder %s1275_s13, %s1275_s13 }
  0x2d   :  { %1494 = vmatprep.subr.bf16.mxu1 %v1741_v0  ;;  %1503 = vmatprep.subr.bf16.mxu0 %v1741_v0  ;;  %v1311_v15 = vsel %vm319_vm2, 1.0, %v1743_v1  ;;  %vm1865_vm5 = vmand %vm215_vm3, %vm216_vm4  ;;  %vm446_vm7 = vcmp.gt.s32.totalorder %v1855_v13, 1  ;;  %v56_v5 = vld [vmem:[#allocation3 + $0x18] sm:$0xff]  ;;  %v58_v7 = vld [vmem:[#allocation3 + $0x28] sm:$0xff]  ;;  %vm575_vm8 = vcmp.gt.s32.totalorder %v1855_v13, 2  ;;  %vm704_vm9 = vcmp.gt.s32.totalorder %v1855_v13, 3 }
  0x2e   :  { %324 = vperm.xlu1 %1553, %v1311_v15   ;;  %v328_v16 = vsub.f32 1.0, %v1311_v15  ;;  %v1314_v57 = vsel %vm446_vm7, 1.0, %v1743_v1  ;;  %vm833_vm10 = vcmp.gt.s32.totalorder %v1855_v13, 4  ;;  %vm962_vm11 = vcmp.gt.s32.totalorder %v1855_v13, 5  ;;  %s1261_s17 = sshll.u32 %s1750_s16, 4  ;;  %s1663_s18 = scalar_lea.vmem %s1275_s13, 128  ;;  %s2038_s17 = int_to_ptr.vmem [resolvable:$true] %s1261_s17 }
  0x2f   :  { %1388 = vmatmul.mubr.msk.f32.vlgmr.msra.gmra.mrb[0].mxu0 %vm70_vm1, %v54_v11  ;;  %v455_v60 = vsub.f32 1.0, %v1314_v57  ;;  %v60_v11 = vld [vmem:[#allocation3 + $0x38] sm:$0xff]  ;;  %vm1091_vm12 = vcmp.gt.s32.totalorder %v1855_v13, 6  ;;  %vm1220_vm13 = vcmp.gt.s32.totalorder %v1855_v13, 7  ;;  %p1664_p2 = scmp.ne.s32.totalorder %s1275_s13, %s1663_s18  ;;  %p1669_p4 = scmp.lt.s32.totalorder %s1663_s18, %s1663_s18 }
  0x30   :  { %1496 = vmatpush3.bf16.msra.mxu1 %v1834_v12  ;;  %1505 = vmatpush3.bf16.msra.mxu0 %v1830_v8 }
  0x31   :  { %1497 = vmatprep.subr.bf16.mxu1 %v1741_v0  ;;  %1506 = vmatprep.subr.bf16.mxu0 %v1741_v0  ;;  %p1670_p5 = por %p1669_p4, %p1668_p3 }
  0x32   :  { %331 = vperm.xlu1 %1553, %v328_v16   ;;  %1390 = vmatprep.mubr.msk.f32.mxu0 %vm70_vm1, %v55_v4 }
  0x33   :  { %1408 = vmatmul.mubr.f32.vlgmr.msra.gmra.mrb[0].mxu1 %v1743_v1  ;;  %1391 = vmatmul.mubr.msk.f32.gmra.mrb[2].mxu0 %vm70_vm1, %v56_v5  ;;  %p1671_p6 = pnand %p1670_p5, %p1664_p2 }
  0x34   :  { %1499 = vmatpush3.bf16.msra.mxu1 %v1830_v8  ;;  %1418 = vmatprep.mubr.msk.f32.mxu1 %vm1742_vm0, %v1743_v1 }
  0x35   :  { %1500 = vmatprep.subr.bf16.mxu1 %v1741_v0  ;;  %1508 = vmatpush3.bf16.msra.mxu0 %v1834_v12 }
  0x36   :  { %1515 = vmatprep.subr.bf16.mxu0 %v1741_v0  ;;  %1393 = vmatprep.mubr.msk.f32.mxu0 %vm70_vm1, %v57_v6 }
  0x37   :  { %1394 = vmatmul.mubr.msk.f32.gmra.mrb[4].mxu0 %vm70_vm1, %v58_v7 }
  0x38   :  { %1502 = vmatpush3.bf16.msra.mxu1 %v1834_v12  ;;  %1396 = vmatprep.mubr.msk.f32.mxu0 %vm70_vm1, %v59_v9  ;;  %v1320_v9 = vsel %vm704_vm9, 1.0, %v1743_v1 }
  0x39   :  { %1509 = vmatprep.subr.bf16.mxu1 %v1741_v0 }
  0x3b   :  { %1397 = vmatmul.mubr.msk.f32.gmra.mrb[6].mxu0 %vm70_vm1, %v60_v11 }
  0x3c   :  { %1429 = vmatprep.mubr.msk.f32.mxu0 %vm1742_vm0, %v1743_v1 }
  0xad   :  { %v325_v39 = vpop.permute.xlu1 %324 }
  0xb1   :  { %v332_v40 = vpop.permute.xlu1 %331 }
  0xb2   :  { %v334_v43 = vmul.f32 0.0, %v332_v40  ;;  %v1317_v40 = vsel %vm575_vm8, 1.0, %v1743_v1 }
 0x102   :  { %v1389_v18 = vpop.f32.mrb[0].mxu0 }
 0x103   :  { %v161_v19 = vpop.f32.mrb[1].mxu0  ;;  %v167_v47 = vadd.f32 %v1389_v18, %v1862_v17 }
 0x104   :  { %v162_v20 = vadd.f32 %v1862_v17, %v161_v19 }
 0x106   :  { %v289_v21 = vpop.f32.mrb[0].mxu1 }
 0x107   :  { %v293_v22 = vadd.f32 %v289_v21, %v162_v20  ;;  %v1409_v23 = vpop.f32.mrb[1].mxu1 }
 0x109   :  { %v1310_v24 = vmul.f32 -1.442695, %v293_v22 }
 0x10b   :  { %1555 = vpow2.f32 %v1310_v24 }
 0x10c   :  { %1557 = vtanh.f32 %v293_v22  ;;  %v1392_v22 = vpop.f32.mrb[2].mxu0 }
 0x10d   :  { %v171_v23 = vpop.f32.mrb[3].mxu0 }
 0x10e   :  { %v1908_v24 = vpop.f32.mrb[4].mxu0 }
 0x115   :  { %v1556_v25 = vpop.eup %1555 }
 0x116   :  { %v298_v27 = vadd.f32 1.0, %v1556_v25  ;;  %v1558_v30 = vpop.eup %1557  ;;  %v1910_v25 = vpop.f32.mrb[5].mxu0 }
 0x117   :  { %v1912_v26 = vpop.f32.mrb[6].mxu0 }
 0x118   :  { %1559 = vrcp.f32 %v298_v27  ;;  %v1914_v27 = vpop.f32.mrb[7].mxu0 }
 0x122   :  { %v1560_v31 = vpop.eup %1559 }
 0x123   :  { %v301_v32 = vsel %vm1865_vm5, %v1558_v30, %v1560_v31  ;;  %v172_v30 = vadd.f32 %v1862_v17, %v171_v23 }
 0x124   :  { %304 = vrot.lane.b32.xlu0 %v301_v32, %s1745_s0  ;;  %v302_v35 = vmul.f32 0.0, %v301_v32 }
 0x196   :  { %v305_v33 = vpop.permute.xlu0 %304 }
 0x197   :  { %v307_v34 = vmul.f32 %v305_v33, %v301_v32 }
 0x199   :  { %309 = vrot.lane.b32.xlu0 %v307_v34, %s1746_s4 }
 0x20b   :  { %v310_v36 = vpop.permute.xlu0 %309 }
 0x20c   :  { %v312_v37 = vadd.f32 %v310_v36, %v302_v35 }
 0x20e   :  { %1561 = vtanh.f32 %v312_v37  ;;  %v336_v61 = vmul.f32 %v325_v39, %v312_v37 }
 0x210   :  { %v1892_v62 = vadd.f32 %v336_v61, %v334_v43 }
 0x218   :  { %v1562_v38 = vpop.eup %1561 }
 0x219   :  { %315 = vrot.lane.b32.xlu0 %v1562_v38, %s1745_s0 }
 0x28b   :  { %v316_v41 = vpop.permute.xlu0 %315 }
 0x28c   :  { %v318_v42 = vmul.f32 %v316_v41, %v301_v32 }
 0x28e   :  { %v1874_v44 = vmul.f32 %v325_v39, %v318_v42 }
 0x290   :  { %v335_v45 = vadd.f32 %v334_v43, %v1874_v44  ;;  %v584_v43 = vsub.f32 1.0, %v1317_v40 }
 0x292   :  { %346 = vrot.lane.b32.xlu1 %v335_v45, %s1746_s4 }
 0x304   :  { %v347_v46 = vpop.permute.xlu1 %346 }
 0x305   :  { %1419 = vmatmul.mubr.msk.f32.vlgmr.msra.gmra.mrb[2].mxu1 %vm219_vm6, %v347_v46 }
 0x306   :  { %1511 = vmatpush3.bf16.msra.mxu1 %v1830_v8  ;;  %1440 = vmatprep.mubr.msk.f32.mxu1 %vm1742_vm0, %v1743_v1 }
 0x307   :  { %1512 = vmatprep.subr.bf16.mxu1 %v1741_v0 }
 0x30a   :  { %1514 = vmatpush3.bf16.msra.mxu1 %v1834_v12 }
 0x30b   :  { %1521 = vmatprep.subr.bf16.mxu1 %v1741_v0 }
 0x3d8   :  { %v416_v48 = vpop.f32.mrb[2].mxu1 }
 0x3d9   :  { %v420_v49 = vadd.f32 %v416_v48, %v167_v47  ;;  %v1420_v50 = vpop.f32.mrb[3].mxu1 }
 0x3db   :  { %v1313_v51 = vmul.f32 -1.442695, %v420_v49 }
 0x3dd   :  { %1563 = vpow2.f32 %v1313_v51 }
 0x3de   :  { %1565 = vtanh.f32 %v420_v49 }
 0x3e7   :  { %v1564_v52 = vpop.eup %1563 }
 0x3e8   :  { %v425_v53 = vadd.f32 1.0, %v1564_v52  ;;  %v1566_v54 = vpop.eup %1565 }
 0x3ea   :  { %1567 = vrcp.f32 %v425_v53 }
 0x3f4   :  { %v1568_v55 = vpop.eup %1567 }
 0x3f5   :  { %v428_v56 = vsel %vm1865_vm5, %v1566_v54, %v1568_v55 }
 0x3f6   :  { %431 = vrot.lane.b32.xlu0 %v428_v56, %s1745_s0  ;;  %v429_v63 = vmul.f32 %v428_v56, %v1892_v62 }
 0x3fa   :  { %451 = vperm.xlu0 %1554, %v1314_v57  }
 0x468   :  { %v432_v58 = vpop.permute.xlu0 %431 }
 0x469   :  { %v434_v59 = vmul.f32 %v432_v58, %v428_v56 }
 0x46b   :  { %436 = vrot.lane.b32.xlu1 %v434_v59, %s1746_s4 }
 0x46f   :  { %458 = vperm.xlu1 %1553, %v455_v60   ;;  %v177_v60 = vadd.f32 %v1392_v22, %v1862_v17 }
 0x479   :  { %v452_v18 = vpop.permute.xlu0 %451 }
 0x4dd   :  { %v437_v2 = vpop.permute.xlu1 %436 }
 0x4de   :  { %v439_v3 = vadd.f32 %v437_v2, %v429_v63 }
 0x4e0   :  { %1569 = vtanh.f32 %v439_v3  ;;  %v463_v46 = vmul.f32 %v452_v18, %v439_v3 }
 0x4ea   :  { %v1570_v10 = vpop.eup %1569 }
 0x4eb   :  { %442 = vrot.lane.b32.xlu1 %v1570_v10, %s1745_s0 }
 0x4ee   :  { %v459_v14 = vpop.permute.xlu1 %458 }
 0x4ef   :  { %v461_v19 = vmul.f32 %v459_v14, %v335_v45  ;;  %v464_v45 = vmul.f32 %v459_v14, %v1892_v62  ;;  %v713_v14 = vsub.f32 1.0, %v1320_v9 }
 0x4f1   :  { %v465_v47 = vadd.f32 %v464_v45, %v463_v46 }
 0x55d   :  { %v443_v15 = vpop.permute.xlu1 %442 }
 0x55e   :  { %v445_v16 = vmul.f32 %v443_v15, %v428_v56 }
 0x560   :  { %v1904_v20 = vmul.f32 %v452_v18, %v445_v16 }
 0x562   :  { %v462_v21 = vadd.f32 %v461_v19, %v1904_v20 }
 0x564   :  { %475 = vrot.lane.b32.xlu0 %v462_v21, %s1746_s4 }
 0x5d6   :  { %v476_v28 = vpop.permute.xlu0 %475 }
 0x5d7   :  { %1430 = vmatmul.mubr.msk.f32.vlgmr.msra.gmra.mrb[8].mxu0 %vm219_vm6, %v476_v28 }
 0x5d8   :  { %1517 = vmatpush3.bf16.msra.mxu0 %v1830_v8  ;;  %1451 = vmatprep.mubr.msk.f32.mxu0 %vm1742_vm0, %v1743_v1 }
 0x5d9   :  { %1518 = vmatprep.subr.bf16.mxu0 %v1741_v0 }
 0x5dc   :  { %1520 = vmatpush3.bf16.msra.mxu0 %v1834_v12 }
 0x5dd   :  { %1527 = vmatprep.subr.bf16.mxu0 %v1741_v0 }
 0x6aa   :  { %v545_v31 = vpop.f32.mrb[8].mxu0 }
 0x6ab   :  { %v549_v32 = vadd.f32 %v545_v31, %v172_v30  ;;  %v1431_v33 = vpop.f32.mrb[9].mxu0 }
 0x6ad   :  { %v1316_v34 = vmul.f32 -1.442695, %v549_v32 }
 0x6af   :  { %1571 = vpow2.f32 %v1316_v34 }
 0x6b0   :  { %1573 = vtanh.f32 %v549_v32 }
 0x6b9   :  { %v1572_v35 = vpop.eup %1571 }
 0x6ba   :  { %v554_v36 = vadd.f32 1.0, %v1572_v35  ;;  %v1574_v37 = vpop.eup %1573 }
 0x6bc   :  { %1575 = vrcp.f32 %v554_v36 }
 0x6c6   :  { %v1576_v38 = vpop.eup %1575 }
 0x6c7   :  { %v557_v39 = vsel %vm1865_vm5, %v1574_v37, %v1576_v38  ;;  %v182_v37 = vadd.f32 %v1862_v17, %v1910_v25  ;;  %v1323_v25 = vsel %vm833_vm10, 1.0, %v1743_v1 }
 0x6c8   :  { %560 = vrot.lane.b32.xlu1 %v557_v39, %s1745_s0  ;;  %v558_v48 = vmul.f32 %v557_v39, %v465_v47 }
 0x6cc   :  { %580 = vperm.xlu1 %1553, %v1317_v40  }
 0x73a   :  { %v561_v41 = vpop.permute.xlu1 %560 }
 0x73b   :  { %v563_v42 = vmul.f32 %v561_v41, %v557_v39 }
 0x73d   :  { %565 = vrot.lane.b32.xlu0 %v563_v42, %s1746_s4 }
 0x741   :  { %587 = vperm.xlu0 %1554, %v584_v43  }
 0x74b   :  { %v581_v52 = vpop.permute.xlu1 %580 }
 0x7af   :  { %v566_v49 = vpop.permute.xlu0 %565 }
 0x7b0   :  { %v568_v50 = vadd.f32 %v566_v49, %v558_v48 }
 0x7b2   :  { %1577 = vtanh.f32 %v568_v50  ;;  %v592_v16 = vmul.f32 %v581_v52, %v568_v50  ;;  %v842_v50 = vsub.f32 1.0, %v1323_v25 }
 0x7bc   :  { %v1578_v51 = vpop.eup %1577 }
 0x7bd   :  { %571 = vrot.lane.b32.xlu1 %v1578_v51, %s1745_s0 }
 0x7c0   :  { %v588_v53 = vpop.permute.xlu0 %587 }
 0x7c1   :  { %v590_v56 = vmul.f32 %v588_v53, %v462_v21  ;;  %v593_v15 = vmul.f32 %v588_v53, %v465_v47 }
 0x7c3   :  { %v594_v18 = vadd.f32 %v593_v15, %v592_v16 }
 0x82f   :  { %v572_v54 = vpop.permute.xlu1 %571 }
 0x830   :  { %v574_v55 = vmul.f32 %v572_v54, %v557_v39 }
 0x832   :  { %v1932_v57 = vmul.f32 %v581_v52, %v574_v55 }
 0x834   :  { %v591_v58 = vadd.f32 %v590_v56, %v1932_v57 }
 0x836   :  { %604 = vrot.lane.b32.xlu0 %v591_v58, %s1746_s4 }
 0x8a8   :  { %v605_v59 = vpop.permute.xlu0 %604 }
 0x8a9   :  { %1441 = vmatmul.mubr.msk.f32.vlgmr.msra.gmra.mrb[4].mxu1 %vm219_vm6, %v605_v59 }
 0x8aa   :  { %1523 = vmatpush3.bf16.msra.mxu1 %v1830_v8  ;;  %1462 = vmatprep.mubr.msk.f32.mxu1 %vm1742_vm0, %v1743_v1 }
 0x8ab   :  { %1524 = vmatprep.subr.bf16.mxu1 %v1741_v0 }
 0x8ae   :  { %1526 = vmatpush3.bf16.msra.mxu1 %v1834_v12 }
 0x8af   :  { %1533 = vmatprep.subr.bf16.mxu1 %v1741_v0 }
 0x97c   :  { %v674_v61 = vpop.f32.mrb[4].mxu1 }
 0x97d   :  { %v678_v62 = vadd.f32 %v674_v61, %v177_v60  ;;  %v1442_v63 = vpop.f32.mrb[5].mxu1 }
 0x97f   :  { %v1319_v2 = vmul.f32 -1.442695, %v678_v62 }
 0x981   :  { %1579 = vpow2.f32 %v1319_v2 }
 0x982   :  { %1581 = vtanh.f32 %v678_v62 }
 0x98b   :  { %v1580_v3 = vpop.eup %1579 }
 0x98c   :  { %v683_v4 = vadd.f32 1.0, %v1580_v3  ;;  %v1582_v5 = vpop.eup %1581 }
 0x98e   :  { %1583 = vrcp.f32 %v683_v4 }
 0x998   :  { %v1584_v6 = vpop.eup %1583 }
 0x999   :  { %v686_v7 = vsel %vm1865_vm5, %v1582_v5, %v1584_v6  ;;  %v187_v5 = vadd.f32 %v1908_v24, %v1862_v17 }
 0x99a   :  { %689 = vrot.lane.b32.xlu1 %v686_v7, %s1745_s0  ;;  %v687_v19 = vmul.f32 %v686_v7, %v594_v18 }
 0x99e   :  { %709 = vperm.xlu1 %1553, %v1320_v9  }
 0xa0c   :  { %v690_v10 = vpop.permute.xlu1 %689 }
 0xa0d   :  { %v692_v11 = vmul.f32 %v690_v10, %v686_v7 }
 0xa0f   :  { %694 = vrot.lane.b32.xlu0 %v692_v11, %s1746_s4 }
 0xa13   :  { %716 = vperm.xlu0 %1554, %v713_v14  }
 0xa1d   :  { %v710_v28 = vpop.permute.xlu1 %709 }
 0xa81   :  { %v695_v21 = vpop.permute.xlu0 %694 }
 0xa82   :  { %v697_v22 = vadd.f32 %v695_v21, %v687_v19 }
 0xa84   :  { %1585 = vtanh.f32 %v697_v22  ;;  %v721_v52 = vmul.f32 %v710_v28, %v697_v22 }
 0xa8e   :  { %v1586_v23 = vpop.eup %1585 }
 0xa8f   :  { %700 = vrot.lane.b32.xlu1 %v1586_v23, %s1745_s0 }
 0xa92   :  { %v717_v30 = vpop.permute.xlu0 %716 }
 0xa93   :  { %v719_v33 = vmul.f32 %v717_v30, %v591_v58  ;;  %v722_v51 = vmul.f32 %v717_v30, %v594_v18 }
 0xa95   :  { %v723_v53 = vadd.f32 %v722_v51, %v721_v52 }
 0xb01   :  { %v701_v31 = vpop.permute.xlu1 %700 }
 0xb02   :  { %v703_v32 = vmul.f32 %v701_v31, %v686_v7 }
 0xb04   :  { %v1951_v34 = vmul.f32 %v710_v28, %v703_v32 }
 0xb06   :  { %v720_v35 = vadd.f32 %v719_v33, %v1951_v34 }
 0xb08   :  { %733 = vrot.lane.b32.xlu0 %v720_v35, %s1746_s4 }
 0xb7a   :  { %v734_v36 = vpop.permute.xlu0 %733 }
 0xb7b   :  { %1452 = vmatmul.mubr.msk.f32.vlgmr.msra.gmra.mrb[10].mxu0 %vm219_vm6, %v734_v36 }
 0xb7c   :  { %1529 = vmatpush3.bf16.msra.mxu0 %v1830_v8  ;;  %1473 = vmatprep.mubr.msk.f32.mxu0 %vm1742_vm0, %v1743_v1 }
 0xb7d   :  { %1530 = vmatprep.subr.bf16.mxu0 %v1741_v0 }
 0xb80   :  { %1532 = vmatpush3.bf16.msra.mxu0 %v1834_v12 }
 0xc4e   :  { %v803_v38 = vpop.f32.mrb[10].mxu0 }
 0xc4f   :  { %v807_v39 = vadd.f32 %v803_v38, %v182_v37  ;;  %v1453_v40 = vpop.f32.mrb[11].mxu0 }
 0xc51   :  { %v1322_v41 = vmul.f32 -1.442695, %v807_v39 }
 0xc53   :  { %1587 = vpow2.f32 %v1322_v41  ;;  %v192_v41 = vadd.f32 %v1862_v17, %v1914_v27  ;;  %v1329_v27 = vsel %vm1091_vm12, 1.0, %v1743_v1 }
 0xc54   :  { %1589 = vtanh.f32 %v807_v39 }
 0xc5d   :  { %v1588_v42 = vpop.eup %1587 }
 0xc5e   :  { %v812_v43 = vadd.f32 1.0, %v1588_v42  ;;  %v1590_v45 = vpop.eup %1589 }
 0xc60   :  { %1591 = vrcp.f32 %v812_v43 }
 0xc6a   :  { %v1592_v46 = vpop.eup %1591 }
 0xc6b   :  { %v815_v47 = vsel %vm1865_vm5, %v1590_v45, %v1592_v46 }
 0xc6c   :  { %818 = vrot.lane.b32.xlu1 %v815_v47, %s1745_s0  ;;  %v816_v54 = vmul.f32 %v815_v47, %v723_v53 }
 0xc70   :  { %838 = vperm.xlu1 %1553, %v1323_v25  }
 0xcde   :  { %v819_v48 = vpop.permute.xlu1 %818 }
 0xcdf   :  { %v821_v49 = vmul.f32 %v819_v48, %v815_v47 }
 0xce1   :  { %823 = vrot.lane.b32.xlu0 %v821_v49, %s1746_s4 }
 0xce5   :  { %845 = vperm.xlu0 %1554, %v842_v50  }
 0xcef   :  { %v839_v59 = vpop.permute.xlu1 %838 }
 0xd53   :  { %v824_v55 = vpop.permute.xlu0 %823 }
 0xd54   :  { %v826_v56 = vadd.f32 %v824_v55, %v816_v54 }
 0xd56   :  { %1593 = vtanh.f32 %v826_v56  ;;  %v850_v21 = vmul.f32 %v839_v59, %v826_v56 }
 0xd60   :  { %v1594_v58 = vpop.eup %1593 }
 0xd61   :  { %829 = vrot.lane.b32.xlu1 %v1594_v58, %s1745_s0 }
 0xd64   :  { %v846_v60 = vpop.permute.xlu0 %845 }
 0xd65   :  { %v848_v63 = vmul.f32 %v846_v60, %v720_v35  ;;  %v851_v19 = vmul.f32 %v846_v60, %v723_v53  ;;  %v1100_v53 = vsub.f32 1.0, %v1329_v27 }
 0xd67   :  { %v852_v22 = vadd.f32 %v851_v19, %v850_v21 }
 0xdd3   :  { %v830_v61 = vpop.permute.xlu1 %829 }
 0xdd4   :  { %v832_v62 = vmul.f32 %v830_v61, %v815_v47 }
 0xdd6   :  { %v1970_v2 = vmul.f32 %v839_v59, %v832_v62 }
 0xdd8   :  { %v849_v3 = vadd.f32 %v848_v63, %v1970_v2 }
 0xdda   :  { %862 = vrot.lane.b32.xlu0 %v849_v3, %s1746_s4 }
 0xe4c   :  { %v863_v4 = vpop.permute.xlu0 %862 }
 0xe4d   :  { %1463 = vmatmul.mubr.msk.f32.vlgmr.msra.gmra.mrb[6].mxu1 %vm219_vm6, %v863_v4 }
 0xe4e   :  { %1535 = vmatpush3.bf16.msra.mxu1 %v1830_v8  ;;  %1484 = vmatprep.mubr.msk.f32.mxu1 %vm1742_vm0, %v1743_v1 }
 0xe4f   :  { %1536 = vmatprep.subr.bf16.mxu1 %v1741_v0 }
 0xe52   :  { %1538 = vmatpush3.bf16.msra.mxu1 %v1834_v12  ;;  %v1326_v12 = vsel %vm962_vm11, 1.0, %v1743_v1 }
 0xe53   :  { %v971_v18 = vsub.f32 1.0, %v1326_v12 }
 0xf20   :  { %v932_v6 = vpop.f32.mrb[6].mxu1 }
 0xf21   :  { %v936_v7 = vadd.f32 %v932_v6, %v187_v5  ;;  %v1464_v9 = vpop.f32.mrb[7].mxu1 }
 0xf23   :  { %v1325_v10 = vmul.f32 -1.442695, %v936_v7 }
 0xf25   :  { %1595 = vpow2.f32 %v1325_v10  ;;  %v197_v10 = vadd.f32 %v1912_v26, %v1862_v17  ;;  %v1332_v17 = vsel %vm1220_vm13, 1.0, %v1743_v1 }
 0xf26   :  { %1597 = vtanh.f32 %v936_v7  ;;  %v1229_v21 = vsub.f32 1.0, %v1332_v17 }
 0xf2f   :  { %v1596_v11 = vpop.eup %1595 }
 0xf30   :  { %v941_v14 = vadd.f32 1.0, %v1596_v11  ;;  %v1598_v8 = vpop.eup %1597 }
 0xf32   :  { %1599 = vrcp.f32 %v941_v14 }
 0xf3c   :  { %v1600_v15 = vpop.eup %1599 }
 0xf3d   :  { %v944_v0 = vsel %vm1865_vm5, %v1598_v8, %v1600_v15 }
 0xf3e   :  { %947 = vrot.lane.b32.xlu1 %v944_v0, %s1745_s0  ;;  %v945_v23 = vmul.f32 %v944_v0, %v852_v22 }
 0xf42   :  { %967 = vperm.xlu1 %1553, %v1326_v12  }
 0xfb0   :  { %v948_v24 = vpop.permute.xlu1 %947 }
 0xfb1   :  { %v950_v16 = vmul.f32 %v948_v24, %v944_v0 }
 0xfb3   :  { %952 = vrot.lane.b32.xlu0 %v950_v16, %s1746_s4 }
 0xfb7   :  { %974 = vperm.xlu0 %1554, %v971_v18  }
 0xfc1   :  { %v968_v32 = vpop.permute.xlu1 %967 }
0x1025   :  { %v953_v28 = vpop.permute.xlu0 %952 }
0x1026   :  { %v955_v30 = vadd.f32 %v953_v28, %v945_v23 }
0x1028   :  { %1601 = vtanh.f32 %v955_v30  ;;  %v979_v55 = vmul.f32 %v968_v32, %v955_v30 }
0x1032   :  { %v1602_v31 = vpop.eup %1601 }
0x1033   :  { %958 = vrot.lane.b32.xlu1 %v1602_v31, %s1745_s0 }
0x1036   :  { %v975_v33 = vpop.permute.xlu0 %974 }
0x1037   :  { %v977_v37 = vmul.f32 %v975_v33, %v849_v3  ;;  %v980_v54 = vmul.f32 %v975_v33, %v852_v22 }
0x1039   :  { %v981_v56 = vadd.f32 %v980_v54, %v979_v55 }
0x10a5   :  { %v959_v35 = vpop.permute.xlu1 %958 }
0x10a6   :  { %v961_v36 = vmul.f32 %v959_v35, %v944_v0 }
0x10a8   :  { %v1989_v38 = vmul.f32 %v968_v32, %v961_v36 }
0x10aa   :  { %v978_v39 = vadd.f32 %v977_v37, %v1989_v38 }
0x10ac   :  { %991 = vrot.lane.b32.xlu0 %v978_v39, %s1746_s4 }
0x111e   :  { %v992_v40 = vpop.permute.xlu0 %991 }
0x111f   :  { %1474 = vmatmul.mubr.msk.f32.vlgmr.msra.gmra.mrb[12].mxu0 %vm219_vm6, %v992_v40 }
0x11f2   :  { %v1061_v42 = vpop.f32.mrb[12].mxu0 }
0x11f3   :  { %v1065_v43 = vadd.f32 %v1061_v42, %v192_v41  ;;  %v1475_v45 = vpop.f32.mrb[13].mxu0 }
0x11f5   :  { %v1328_v46 = vmul.f32 -1.442695, %v1065_v43 }
0x11f7   :  { %1603 = vpow2.f32 %v1328_v46 }
0x11f8   :  { %1605 = vtanh.f32 %v1065_v43 }
0x1201   :  { %v1604_v47 = vpop.eup %1603 }
0x1202   :  { %v1070_v25 = vadd.f32 1.0, %v1604_v47  ;;  %v1606_v48 = vpop.eup %1605 }
0x1204   :  { %1607 = vrcp.f32 %v1070_v25 }
0x120e   :  { %v1608_v49 = vpop.eup %1607 }
0x120f   :  { %v1073_v50 = vsel %vm1865_vm5, %v1606_v48, %v1608_v49 }
0x1210   :  { %1076 = vrot.lane.b32.xlu1 %v1073_v50, %s1745_s0  ;;  %v1074_v58 = vmul.f32 %v1073_v50, %v981_v56 }
0x1214   :  { %1096 = vperm.xlu1 %1553, %v1329_v27  }
0x1282   :  { %v1077_v51 = vpop.permute.xlu1 %1076 }
0x1283   :  { %v1079_v52 = vmul.f32 %v1077_v51, %v1073_v50 }
0x1285   :  { %1081 = vrot.lane.b32.xlu0 %v1079_v52, %s1746_s4 }
0x1289   :  { %1103 = vperm.xlu0 %1554, %v1100_v53  }
0x1293   :  { %v1097_v62 = vpop.permute.xlu1 %1096 }
0x12f7   :  { %v1082_v59 = vpop.permute.xlu0 %1081 }
0x12f8   :  { %v1084_v60 = vadd.f32 %v1082_v59, %v1074_v58 }
0x12fa   :  { %1609 = vtanh.f32 %v1084_v60  ;;  %v1108_v29 = vmul.f32 %v1097_v62, %v1084_v60 }
0x1304   :  { %v1610_v61 = vpop.eup %1609 }
0x1305   :  { %1087 = vrot.lane.b32.xlu1 %v1610_v61, %s1745_s0 }
0x1308   :  { %v1104_v63 = vpop.permute.xlu0 %1103 }
0x1309   :  { %v1106_v5 = vmul.f32 %v1104_v63, %v978_v39  ;;  %v1109_v13 = vmul.f32 %v1104_v63, %v981_v56 }
0x130b   :  { %v1110_v22 = vadd.f32 %v1109_v13, %v1108_v29 }
0x1377   :  { %v1088_v3 = vpop.permute.xlu1 %1087 }
0x1378   :  { %v1090_v4 = vmul.f32 %v1088_v3, %v1073_v50 }
0x137a   :  { %v1099_v6 = vmul.f32 %v1097_v62, %v1090_v4 }
0x137c   :  { %v1107_v7 = vadd.f32 %v1106_v5, %v1099_v6 }
0x137e   :  { %1120 = vrot.lane.b32.xlu0 %v1107_v7, %s1746_s4 }
0x13f0   :  { %v1121_v9 = vpop.permute.xlu0 %1120 }
0x13f1   :  { %1485 = vmatmul.mubr.msk.f32.vlgmr.msra.gmra.mrb[8].mxu1 %vm219_vm6, %v1121_v9 }
0x14c4   :  { %v1190_v11 = vpop.f32.mrb[8].mxu1 }
0x14c5   :  { %v1194_v14 = vadd.f32 %v1190_v11, %v197_v10  ;;  %v1486_v8 = vpop.f32.mrb[9].mxu1 }
0x14c7   :  { %v1331_v15 = vmul.f32 -1.442695, %v1194_v14 }
0x14c9   :  { %1611 = vpow2.f32 %v1331_v15 }
0x14ca   :  { %1613 = vtanh.f32 %v1194_v14 }
0x14d3   :  { %v1612_v0 = vpop.eup %1611 }
0x14d4   :  { %v1199_v12 = vadd.f32 1.0, %v1612_v0  ;;  %v1614_v24 = vpop.eup %1613 }
0x14d6   :  { %1615 = vrcp.f32 %v1199_v12 }
0x14e0   :  { %v1616_v16 = vpop.eup %1615 }
0x14e1   :  { %v1202_v18 = vsel %vm1865_vm5, %v1614_v24, %v1616_v16 }
0x14e2   :  { %1205 = vrot.lane.b32.xlu1 %v1202_v18, %s1745_s0  ;;  %v1203_v1 = vmul.f32 %v1202_v18, %v1110_v22 }
0x14e6   :  { %1225 = vperm.xlu1 %1553, %v1332_v17  }
0x1554   :  { %v1206_v26 = vpop.permute.xlu1 %1205 }
0x1555   :  { %v1208_v19 = vmul.f32 %v1206_v26, %v1202_v18 }
0x1557   :  { %1210 = vrot.lane.b32.xlu0 %v1208_v19, %s1746_s4 }
0x155b   :  { %1232 = vperm.xlu0 %1554, %v1229_v21  }
0x155f   :  { %467 = vrot.lane.b32.xlu0 %v1904_v20, %s1746_s4 }
0x1563   :  { %725 = vrot.lane.b32.xlu0 %v1951_v34, %s1746_s4 }
0x1565   :  { %v1226_v33 = vpop.permute.xlu1 %1225 }
0x1567   :  { %983 = vrot.lane.b32.xlu0 %v1989_v38, %s1746_s4 }
0x15c9   :  { %v1211_v23 = vpop.permute.xlu0 %1210 }
0x15ca   :  { %v1213_v28 = vadd.f32 %v1211_v23, %v1203_v1 }
0x15cc   :  { %1617 = vtanh.f32 %v1213_v28  ;;  %v1237_v36 = vmul.f32 %v1226_v33, %v1213_v28 }
0x15d6   :  { %v1618_v30 = vpop.eup %1617 }
0x15d7   :  { %1216 = vrot.lane.b32.xlu1 %v1618_v30, %s1745_s0 }
0x15da   :  { %v1233_v31 = vpop.permute.xlu0 %1232 }
0x15db   :  { %339 = vrot.lane.b32.xlu1 %v1874_v44, %s1746_s4  ;;  %v1238_v32 = vmul.f32 %v1233_v31, %v1110_v22 }
0x15dd   :  { %v1239_v44 = vadd.f32 %v1238_v32, %v1237_v36 }
0x15de   :  { %v468_v20 = vpop.permute.xlu0 %467 }
0x15df   :  { %471 = vst.msk [vmem:[#allocation8 + $0x8] sm:$0xff] %vm219_vm6, %v468_v20  ;;  %596 = vrot.lane.b32.xlu1 %v1932_v57, %s1746_s4  ;;  %v1235_v57 = vmul.f32 %v1233_v31, %v1107_v7 }
0x15e2   :  { %v726_v34 = vpop.permute.xlu0 %725 }
0x15e3   :  { %729 = vst.msk [vmem:[#allocation8 + $0x18] sm:$0xff] %vm219_vm6, %v726_v34  ;;  %854 = vrot.lane.b32.xlu1 %v1970_v2, %s1746_s4 }
0x15e6   :  { %v984_v35 = vpop.permute.xlu0 %983 }
0x15e7   :  { %987 = vst.msk [vmem:[#allocation8 + $0x28] sm:$0xff] %vm219_vm6, %v984_v35  ;;  %1112 = vrot.lane.b32.xlu1 %v1099_v6, %s1746_s4 }
0x15eb   :  { %1252 = vrot.lane.b32.xlu1 %v1239_v44, %s1747_s9 }
0x1649   :  { %v1217_v37 = vpop.permute.xlu1 %1216 }
0x164a   :  { %v1219_v38 = vmul.f32 %v1217_v37, %v1202_v18 }
0x164c   :  { %v1228_v39 = vmul.f32 %v1226_v33, %v1219_v38 }
0x164d   :  { %v340_v40 = vpop.permute.xlu1 %339 }
0x164e   :  { %342 = vst.msk [vmem:[#allocation8] sm:$0xff] %vm219_vm6, %v340_v40  ;;  %v1236_v41 = vadd.f32 %v1235_v57, %v1228_v39 }
0x1650   :  { %1247 = vrot.lane.b32.xlu0 %v1236_v41, %s1746_s4 }
0x1651   :  { %v597_v2 = vpop.permute.xlu1 %596 }
0x1652   :  { %600 = vst.msk [vmem:[#allocation8 + $0x10] sm:$0xff] %vm219_vm6, %v597_v2 }
0x1654   :  { %1241 = vrot.lane.b32.xlu0 %v1228_v39, %s1746_s4 }
0x1655   :  { %v855_v42 = vpop.permute.xlu1 %854 }
0x1656   :  { %858 = vst.msk [vmem:[#allocation8 + $0x20] sm:$0xff] %vm219_vm6, %v855_v42 }
0x1659   :  { %v1113_v43 = vpop.permute.xlu1 %1112 }
0x165a   :  { %1116 = vst.msk [vmem:[#allocation8 + $0x30] sm:$0xff] %vm219_vm6, %v1113_v43 }
0x165d   :  { %v1253_v45 = vpop.permute.xlu1 %1252 }
0x165e   :  { %1255 = vst.msk [vmem:[#allocation11] sm:$0xff] %vm219_vm6, %v1253_v45 }
0x16c2   :  { %v1248_v46 = vpop.permute.xlu0 %1247 }
0x16c3   :  { %1250 = vst.msk [vmem:[#allocation9] sm:$0xff] %vm219_vm6, %v1248_v46 }
0x16c4   :  { %1674 = shalt.err (!%p1671_p6)
}
0x16c5   :  { %s1675_s21 = scalar_lea.hbm %s2091_s6, 128 }
0x16c6   :  { %p1676_p7 = scmp.ne.s32.totalorder %s2091_s6, %s1675_s21  ;;  %p1679_p8 = scmp.lt.u32.totalorder %s1675_s21, %s2091_s6 }
0x16c8   :  { %p1681_p9 = pnand %p1679_p8, %p1676_p7 }
0x16ca   :  { %1684 = shalt.err (!%p1681_p9)
}
0x16cb   :  { %1277 = dma.vmem_to_hbm [thread:$0]  %s1275_s13, 128, %s2091_s6, [#allocation10]  }
0x16cc   :  { %s1685_s27 = scalar_lea.vmem %s1285_s15, 128  ;;  %p1690_p11 = scmp.lt.s32.totalorder %s1285_s15, %s1285_s15 }
0x16cd   :  { %p1686_p10 = scmp.ne.s32.totalorder %s1285_s15, %s1685_s27  ;;  %p1691_p12 = scmp.lt.s32.totalorder %s1685_s27, %s1685_s27 }
0x16cf   :  { %p1692_p13 = por %p1691_p12, %p1690_p11 }
0x16d1   :  { %p1693_p0 = pnand %p1692_p13, %p1686_p10 }
0x16d3   :  { %1696 = shalt.err (!%p1693_p0)
}
0x16d4   :  { %s1697_s2 = scalar_lea.hbm %s2092_s7, 128 }
0x16d5   :  { %p1698_p1 = scmp.ne.s32.totalorder %s2092_s7, %s1697_s2  ;;  %p1701_p2 = scmp.lt.u32.totalorder %s1697_s2, %s2092_s7 }
0x16d7   :  { %p1703_p3 = pnand %p1701_p2, %p1698_p1 }
0x16d9   :  { %1706 = shalt.err (!%p1703_p3)
}
0x16da   :  { %1287 = dma.vmem_to_hbm [thread:$0]  %s1285_s15, 128, %s2092_s7, [#allocation10]   ;;  %v1242_v47 = vpop.permute.xlu0 %1241 }
0x16db   :  { %1245 = vst.msk [vmem:[#allocation8 + $0x38] sm:$0xff] %vm219_vm6, %v1242_v47  ;;  %s1707_s9 = scalar_lea.vmem %s2038_s17, 1024  ;;  %p1712_p5 = scmp.lt.s32.totalorder %s2038_s17, %s2038_s17 }
0x16dc   :  { %p1708_p4 = scmp.ne.s32.totalorder %s2038_s17, %s1707_s9  ;;  %p1713_p6 = scmp.lt.s32.totalorder %s1707_s9, %s1707_s9 }
0x16de   :  { %p1714_p7 = por %p1713_p6, %p1712_p5 }
0x16e0   :  { %p1715_p8 = pnand %p1714_p7, %p1708_p4 }
0x16e2   :  { %1718 = shalt.err (!%p1715_p8)
}
0x16e3   :  { %s1719_s14 = scalar_lea.hbm %s2090_s5, 1024 }
0x16e4   :  { %p1720_p9 = scmp.ne.s32.totalorder %s2090_s5, %s1719_s14  ;;  %p1723_p10 = scmp.lt.u32.totalorder %s1719_s14, %s2090_s5 }
0x16e6   :  { %p1725_p11 = pnand %p1723_p10, %p1720_p9 }
0x16e8   :  { %1728 = shalt.err (!%p1725_p11)
}
0x16e9   :  { %1267 = dma.vmem_to_hbm [thread:$0]  %s2038_s17, 1024, %s2090_s5, [#allocation5], %s1738_s11, %s1738_s11, %s1739_s12  }
0x16ea   :  { %1733 = dma.done.wait [#allocation5], 1024  }
0x16eb   :  { %1734 = vsyncadd [#allocation5], 4294966272 }
0x16ec   :  { %1735 = dma.done.wait [#allocation10], 256  }
0x16ed   :  { %1736 = vsyncadd [#allocation10], 4294967040 }
0x16ee   :  { %1297 = vsyncpa [#allocation4], 1 }
0x16ef   :  { %1298 = vsyncpa [#allocation7], 1 }
0x16f0   :  { %1299 = vsyncpa [#allocation5], 1 }
0x16f1   :  { %1300 = vsyncpa [#allocation10], 1 }

</bundles_post_ra>
